<compile_context>
chip_gen: v7x
topology: tpu7x:2x2x1
jax: 0.10.0
libtpu: 0.0.40
codegen_flags: <defaults>
</compile_context>

<pallas_src>
import numpy as np

import jax
import jax.numpy as jnp
from jax.experimental import pallas as pl
from jax.experimental.pallas import tpu as pltpu


# ----------------------------------------------------------------------------
# Fused LeNet-5 forward kernel
# ----------------------------------------------------------------------------
def _sigmoid(z):
    # sigmoid(z) = 0.5 * tanh(z / 2) + 0.5  -> a single EUP transcendental per element.
    return 0.5 * jnp.tanh(0.5 * z) + 0.5


def _shift_rows(x, k):
    # shifted[r] = x[r + k]; rows wrap around, but wrapped rows only ever land in
    # row slots this kernel never reads (each image owns a 32-row block and all
    # valid reads stay inside their own block).  Static slices + one sublane concat.
    if k == 0:
        return x
    return jnp.concatenate([x[k:], x[:k]], axis=0)


def _lenet_kernel(x_ref, kb1_ref, b1v_ref, kb2_ref, b2v_ref,
                  wc_ref, bc_ref, wf2_ref, bf2_ref, out_ref):
    """Fused LeNet-5 forward for one batch tile.

    x_ref  : (NB*32, 32) f32  row b*32 + h is row h of image b
    kb1_ref: (5, 32, 256) f32 conv1 banded weights (per kernel row i); columns pack
                              [pool phase e | pooled col q | out channel c] = e*128 + q*6 + c
    kb2_ref: (5, 128, 256)f32 conv2 banded weights; rows are pool1 lanes (q*6 + ci),
                              columns pack e*128 + v*16 + co
    wc_ref : (5, 128, 128)f32 conv3 (+fc1, fused offline) weights; rows are pool2 lanes
    wf2_ref: (128, 128)   f32 fc2 weights zero-padded (rows>=64 and cols>=10 are 0)
    b*_ref : (1, 128)     f32 biases in the matching lane layouts (padding lanes 0)
    out_ref: (NB, 128)    f32 logits, real values in lanes [0, 10)
    """
    f32 = jnp.float32
    nb = out_ref.shape[0]                     # images in this batch tile

    x = x_ref[...]                            # (nb*32, 32) -- loaded once

    # ---- conv1 (1->6, 5x5): 5 banded MXU matmuls over the H taps ----------------
    acc1 = jnp.dot(x, kb1_ref[0], preferred_element_type=f32)            # (nb*32, 256)
    for i in range(1, 5):
        acc1 = acc1 + jnp.dot(_shift_rows(x, i), kb1_ref[i],
                              preferred_element_type=f32)
    # 2x2 max-pool (commutes with the per-channel bias + monotone sigmoid):
    mw1 = jnp.maximum(acc1[:, :128], acc1[:, 128:])      # W pool: even|odd phase halves
    mh1 = jnp.maximum(mw1, _shift_rows(mw1, 1))          # H pool: adjacent rows
    p1 = _sigmoid(mh1 + b1v_ref[...])                    # valid rows: b*32 + 2*hp, hp<14

    # ---- conv2 (6->16, 5x5): same banded-matmul scheme on 128-lane activations ---
    acc2 = jnp.dot(p1, kb2_ref[0], preferred_element_type=f32)           # (nb*32, 256)
    for i in range(1, 5):
        acc2 = acc2 + jnp.dot(_shift_rows(p1, 2 * i), kb2_ref[i],
                              preferred_element_type=f32)
    mw2 = jnp.maximum(acc2[:, :128], acc2[:, 128:])
    mh2 = jnp.maximum(mw2, _shift_rows(mw2, 2))
    p2 = _sigmoid(mh2 + b2v_ref[...])                    # valid rows: b*32 + 4*hp, hp<5

    # ---- conv3 (16->120) fused with fc1 (120->64): 5 row-shifted MXU matmuls -----
    h1p = jnp.dot(p2, wc_ref[0], preferred_element_type=f32)             # (nb*32, 128)
    for y in range(1, 5):
        h1p = h1p + jnp.dot(_shift_rows(p2, 4 * y), wc_ref[y],
                            preferred_element_type=f32)
    # Gather the single valid row per image (row b*32) -> (nb, 128).
    h1p = jnp.concatenate([h1p[b * 32:b * 32 + 1, :] for b in range(nb)], axis=0)
    h1 = _sigmoid(h1p + bc_ref[...])                     # lanes >= 64 are inert padding

    # ---- fc2 (64->10), zero-padded to a 128-lane lane-dense output ---------------
    out_ref[...] = (jnp.dot(h1, wf2_ref[...], preferred_element_type=f32)
                    + bf2_ref[...]).astype(out_ref.dtype)


def lenet_forward(prepped, x, batch_tile=None):
    """x: (N, 1, 32, 32) f32 -> logits (N, 10) f32."""
    n = x.shape[0]
    assert x.shape[1:] == (1, 32, 32), x.shape
    if batch_tile is None:
        # 256 images/tile keeps the working set far below v7x's 64 MiB/TC VMEM;
        # the batch grid axis is 'parallel' so v7x's two TensorCores split tiles.
        batch_tile = n if n <= 256 else 256
    assert n % batch_tile == 0, (n, batch_tile)
    num_tiles = n // batch_tile

    # Free row-major reshape: row b*32 + h of xr is image b, image row h.
    xr = x.reshape(n * 32, 32)

    def _const_spec(shape):
        zeros = (0,) * len(shape)
        return pl.BlockSpec(shape, lambda b, _z=zeros: _z)

    out = pl.pallas_call(
        _lenet_kernel,
        out_shape=jax.ShapeDtypeStruct((n, 128), jnp.float32),
        grid=(num_tiles,),
        in_specs=[
            pl.BlockSpec((batch_tile * 32, 32), lambda b: (b, 0)),
            _const_spec(prepped["kb1"].shape),
            _const_spec(prepped["b1v"].shape),
            _const_spec(prepped["kb2"].shape),
            _const_spec(prepped["b2v"].shape),
            _const_spec(prepped["wc"].shape),
            _const_spec(prepped["bc"].shape),
            _const_spec(prepped["wf2"].shape),
            _const_spec(prepped["bf2"].shape),
        ],
        out_specs=pl.BlockSpec((batch_tile, 128), lambda b: (b, 0)),
        compiler_params=pltpu.CompilerParams(
            dimension_semantics=("parallel",),
            vmem_limit_bytes=32 * 1024 * 1024),
    )(xr, prepped["kb1"], prepped["b1v"], prepped["kb2"], prepped["b2v"],
      prepped["wc"], prepped["bc"], prepped["wf2"], prepped["bf2"])
    # Only the first 10 lanes are real logits; the rest is zero padding.
    return out[:, :10]


# ----------------------------------------------------------------------------
# Parameters: PyTorch-layout init + one-time offline repack into banded layouts
# ----------------------------------------------------------------------------
def init_lenet_params(key):
    keys = jax.random.split(key, 10)
    scale = 0.1

    def norm(k, shape):
        return scale * jax.random.normal(k, shape, dtype=jnp.float32)

    return {
        "conv1_w": norm(keys[0], (6, 1, 5, 5)),    "conv1_b": norm(keys[1], (6,)),
        "conv2_w": norm(keys[2], (16, 6, 5, 5)),   "conv2_b": norm(keys[3], (16,)),
        "conv3_w": norm(keys[4], (120, 16, 5, 5)), "conv3_b": norm(keys[5], (120,)),
        "fc1_w":   norm(keys[6], (64, 120)),       "fc1_b":   norm(keys[7], (64,)),
        "fc2_w":   norm(keys[8], (10, 64)),        "fc2_b":   norm(keys[9], (10,)),
    }


def prepare_params(p):
    """One-time offline repack of the PyTorch-layout weights into the kernel's
    lane-dense banded / fused layouts.  All zero padding is baked in here so the
    in-kernel garbage lanes (sigmoid(0)=0.5) never contribute downstream."""
    w1 = np.asarray(p["conv1_w"], np.float32)     # (6, 1, 5, 5)
    b1 = np.asarray(p["conv1_b"], np.float32)
    w2 = np.asarray(p["conv2_w"], np.float32)     # (16, 6, 5, 5)
    b2 = np.asarray(p["conv2_b"], np.float32)
    w3 = np.asarray(p["conv3_w"], np.float32)     # (120, 16, 5, 5)
    b3 = np.asarray(p["conv3_b"], np.float32)
    f1w = np.asarray(p["fc1_w"], np.float32)      # (64, 120)
    f1b = np.asarray(p["fc1_b"], np.float32)
    f2w = np.asarray(p["fc2_w"], np.float32)      # (10, 64)
    f2b = np.asarray(p["fc2_b"], np.float32)

    # conv1 banded matrices (one per kernel row i); output column w = 2*q + e with
    # the pool phase e baked into the lane layout e*128 + q*6 + c.
    kb1 = np.zeros((5, 32, 256), np.float32)
    for i in range(5):
        for e in range(2):
            for q in range(14):
                for j in range(5):
                    u = 2 * q + e + j                           # input column (< 32)
                    kb1[i, u, e * 128 + q * 6:e * 128 + q * 6 + 6] = w1[:, 0, i, j]
    b1v = np.zeros((1, 128), np.float32)
    for q in range(14):
        b1v[0, q * 6:q * 6 + 6] = b1

    # conv2 banded matrices; rows are pool1 lanes (q*6 + ci), columns e*128 + v*16 + co.
    kb2 = np.zeros((5, 128, 256), np.float32)
    for i in range(5):
        for e in range(2):
            for v in range(5):
                for j in range(5):
                    q = 2 * v + e + j                           # pool1 column (< 14)
                    for ci in range(6):
                        kb2[i, q * 6 + ci,
                            e * 128 + v * 16:e * 128 + v * 16 + 16] = w2[:, ci, i, j]
    b2v = np.zeros((1, 128), np.float32)
    for v in range(5):
        b2v[0, v * 16:v * 16 + 16] = b2

    # conv3 + fc1 fused offline (the model applies no activation between them):
    # wc[y][v*16 + ci, o] = sum_k conv3_w[k, ci, y, v] * fc1_w[o, k]
    fused = np.einsum("ok,kcyv->yvco", f1w, w3)                 # (5, 5, 16, 64)
    wc = np.zeros((5, 128, 128), np.float32)
    for y in range(5):
        wc[y, :80, :64] = fused[y].reshape(80, 64)
    bc = np.zeros((1, 128), np.float32)
    bc[0, :64] = f1w @ b3 + f1b

    # fc2 zero-padded to 128x128 (rows >= 64 are 0 so padded fc1 lanes are inert).
    wf2 = np.zeros((128, 128), np.float32)
    wf2[:64, :10] = f2w.T
    bf2 = np.zeros((1, 128), np.float32)
    bf2[0, :10] = f2b

    packed = dict(kb1=kb1, b1v=b1v, kb2=kb2, b2v=b2v, wc=wc, bc=bc, wf2=wf2, bf2=bf2)
    return {k: jnp.asarray(v) for k, v in packed.items()}


# ----------------------------------------------------------------------------
# Plain-JAX reference (mirrors the PyTorch module) for a numerical sanity check
# ----------------------------------------------------------------------------
def lenet_reference(params, x):
    def conv(a, w, b):
        y = jax.lax.conv_general_dilated(
            a, w, window_strides=(1, 1), padding="VALID",
            dimension_numbers=("NCHW", "OIHW", "NCHW"))
        return y + b[None, :, None, None]

    def pool(a):
        n, c, h, w = a.shape
        return a.reshape(n, c, h // 2, 2, w // 2, 2).max(axis=(3, 5))

    a = pool(jax.nn.sigmoid(conv(x, params["conv1_w"], params["conv1_b"])))
    a = pool(jax.nn.sigmoid(conv(a, params["conv2_w"], params["conv2_b"])))
    a = conv(a, params["conv3_w"], params["conv3_b"]).reshape(x.shape[0], -1)
    a = jax.nn.sigmoid(a @ params["fc1_w"].T + params["fc1_b"])
    return a @ params["fc2_w"].T + params["fc2_b"]


if __name__ == "__main__":
    key = jax.random.PRNGKey(0)
    k_param, k_input = jax.random.split(key)

    params = init_lenet_params(k_param)
    prepped = prepare_params(params)
    # LeNet-5 geometry requires 1x32x32 inputs so conv3 yields 120x1x1.
    x = jax.random.normal(k_input, (2, 1, 32, 32), dtype=jnp.float32)

    out = jax.jit(lenet_forward)(prepped, x)
    out = jax.block_until_ready(out)

    assert out.shape == (2, 10), out.shape
    assert out.dtype == jnp.float32, out.dtype

    ref = lenet_reference(params, x)
    np.testing.assert_allclose(np.asarray(out), np.asarray(ref),
                               rtol=5e-2, atol=5e-2)
    print("KERNEL_OK")
</pallas_src>

<mosaic_0001>
module attributes {stable_mosaic.version = 11 : i64} {
  func.func @_lenet_kernel(%arg0: i32, %arg1: memref<64x32xf32, #tpu.memory_space<vmem>>, %arg2: memref<5x32x256xf32, #tpu.memory_space<vmem>>, %arg3: memref<1x128xf32, #tpu.memory_space<vmem>>, %arg4: memref<5x128x256xf32, #tpu.memory_space<vmem>>, %arg5: memref<1x128xf32, #tpu.memory_space<vmem>>, %arg6: memref<5x128x128xf32, #tpu.memory_space<vmem>>, %arg7: memref<1x128xf32, #tpu.memory_space<vmem>>, %arg8: memref<128x128xf32, #tpu.memory_space<vmem>>, %arg9: memref<1x128xf32, #tpu.memory_space<vmem>>, %arg10: memref<2x128xf32, #tpu.memory_space<vmem>>) attributes {dimension_semantics = [#tpu.dimension_semantics<parallel>], iteration_bounds = array<i64: 1>, scalar_prefetch = 0 : i64, scratch_operands = 0 : i64, tpu.core_type = #tpu.core_type<tc>, window_params = [{transform_indices = @transform_0, window_bounds = array<i64: 64, 32>}, {pipeline_mode = #tpu.pipeline_mode<synchronous>, transform_indices = @transform_1, window_bounds = array<i64: 5, 32, 256>}, {pipeline_mode = #tpu.pipeline_mode<synchronous>, transform_indices = @transform_2, window_bounds = array<i64: 1, 128>}, {pipeline_mode = #tpu.pipeline_mode<synchronous>, transform_indices = @transform_3, window_bounds = array<i64: 5, 128, 256>}, {pipeline_mode = #tpu.pipeline_mode<synchronous>, transform_indices = @transform_4, window_bounds = array<i64: 1, 128>}, {pipeline_mode = #tpu.pipeline_mode<synchronous>, transform_indices = @transform_5, window_bounds = array<i64: 5, 128, 128>}, {pipeline_mode = #tpu.pipeline_mode<synchronous>, transform_indices = @transform_6, window_bounds = array<i64: 1, 128>}, {pipeline_mode = #tpu.pipeline_mode<synchronous>, transform_indices = @transform_7, window_bounds = array<i64: 128, 128>}, {pipeline_mode = #tpu.pipeline_mode<synchronous>, transform_indices = @transform_8, window_bounds = array<i64: 1, 128>}, {transform_indices = @transform_9, window_bounds = array<i64: 2, 128>}]} {
    %c0 = arith.constant 0 : index
    %c0_0 = arith.constant 0 : index
    %0 = vector.load %arg1[%c0, %c0_0] : memref<64x32xf32, #tpu.memory_space<vmem>>, vector<64x32xf32>
    %c0_1 = arith.constant 0 : index
    %c0_2 = arith.constant 0 : index
    %c0_3 = arith.constant 0 : index
    %1 = vector.load %arg2[%c0_1, %c0_2, %c0_3] : memref<5x32x256xf32, #tpu.memory_space<vmem>>, vector<1x32x256xf32>
    %2 = vector.shape_cast %1 : vector<1x32x256xf32> to vector<32x256xf32>
    %cst = arith.constant dense<0.000000e+00> : vector<64x256xf32>
    %3 = tpu.matmul %0, %2, %cst {dimension_numbers = #tpu.dot_dimension_numbers<[1], [0], [0], [1], [0, 0, 1, 1], [], []>} : vector<64x32xf32>, vector<32x256xf32>, vector<64x256xf32> -> vector<64x256xf32>
    %4 = vector.extract_strided_slice %0 {offsets = [1, 0], sizes = [63, 32], strides = [1, 1]} : vector<64x32xf32> to vector<63x32xf32>
    %5 = vector.extract_strided_slice %0 {offsets = [0, 0], sizes = [1, 32], strides = [1, 1]} : vector<64x32xf32> to vector<1x32xf32>
    %6 = tpu.concatenate %4, %5 in 0 : vector<63x32xf32>, vector<1x32xf32> -> vector<64x32xf32>
    %c1 = arith.constant 1 : index
    %c0_4 = arith.constant 0 : index
    %c0_5 = arith.constant 0 : index
    %7 = vector.load %arg2[%c1, %c0_4, %c0_5] : memref<5x32x256xf32, #tpu.memory_space<vmem>>, vector<1x32x256xf32>
    %8 = vector.shape_cast %7 : vector<1x32x256xf32> to vector<32x256xf32>
    %cst_6 = arith.constant dense<0.000000e+00> : vector<64x256xf32>
    %9 = tpu.matmul %6, %8, %cst_6 {dimension_numbers = #tpu.dot_dimension_numbers<[1], [0], [0], [1], [0, 0, 1, 1], [], []>} : vector<64x32xf32>, vector<32x256xf32>, vector<64x256xf32> -> vector<64x256xf32>
    %10 = arith.addf %3, %9 : vector<64x256xf32>
    %11 = vector.extract_strided_slice %0 {offsets = [2, 0], sizes = [62, 32], strides = [1, 1]} : vector<64x32xf32> to vector<62x32xf32>
    %12 = vector.extract_strided_slice %0 {offsets = [0, 0], sizes = [2, 32], strides = [1, 1]} : vector<64x32xf32> to vector<2x32xf32>
    %13 = tpu.concatenate %11, %12 in 0 : vector<62x32xf32>, vector<2x32xf32> -> vector<64x32xf32>
    %c2 = arith.constant 2 : index
    %c0_7 = arith.constant 0 : index
    %c0_8 = arith.constant 0 : index
    %14 = vector.load %arg2[%c2, %c0_7, %c0_8] : memref<5x32x256xf32, #tpu.memory_space<vmem>>, vector<1x32x256xf32>
    %15 = vector.shape_cast %14 : vector<1x32x256xf32> to vector<32x256xf32>
    %cst_9 = arith.constant dense<0.000000e+00> : vector<64x256xf32>
    %16 = tpu.matmul %13, %15, %cst_9 {dimension_numbers = #tpu.dot_dimension_numbers<[1], [0], [0], [1], [0, 0, 1, 1], [], []>} : vector<64x32xf32>, vector<32x256xf32>, vector<64x256xf32> -> vector<64x256xf32>
    %17 = arith.addf %10, %16 : vector<64x256xf32>
    %18 = vector.extract_strided_slice %0 {offsets = [3, 0], sizes = [61, 32], strides = [1, 1]} : vector<64x32xf32> to vector<61x32xf32>
    %19 = vector.extract_strided_slice %0 {offsets = [0, 0], sizes = [3, 32], strides = [1, 1]} : vector<64x32xf32> to vector<3x32xf32>
    %20 = tpu.concatenate %18, %19 in 0 : vector<61x32xf32>, vector<3x32xf32> -> vector<64x32xf32>
    %c3 = arith.constant 3 : index
    %c0_10 = arith.constant 0 : index
    %c0_11 = arith.constant 0 : index
    %21 = vector.load %arg2[%c3, %c0_10, %c0_11] : memref<5x32x256xf32, #tpu.memory_space<vmem>>, vector<1x32x256xf32>
    %22 = vector.shape_cast %21 : vector<1x32x256xf32> to vector<32x256xf32>
    %cst_12 = arith.constant dense<0.000000e+00> : vector<64x256xf32>
    %23 = tpu.matmul %20, %22, %cst_12 {dimension_numbers = #tpu.dot_dimension_numbers<[1], [0], [0], [1], [0, 0, 1, 1], [], []>} : vector<64x32xf32>, vector<32x256xf32>, vector<64x256xf32> -> vector<64x256xf32>
    %24 = arith.addf %17, %23 : vector<64x256xf32>
    %25 = vector.extract_strided_slice %0 {offsets = [4, 0], sizes = [60, 32], strides = [1, 1]} : vector<64x32xf32> to vector<60x32xf32>
    %26 = vector.extract_strided_slice %0 {offsets = [0, 0], sizes = [4, 32], strides = [1, 1]} : vector<64x32xf32> to vector<4x32xf32>
    %27 = tpu.concatenate %25, %26 in 0 : vector<60x32xf32>, vector<4x32xf32> -> vector<64x32xf32>
    %c4 = arith.constant 4 : index
    %c0_13 = arith.constant 0 : index
    %c0_14 = arith.constant 0 : index
    %28 = vector.load %arg2[%c4, %c0_13, %c0_14] : memref<5x32x256xf32, #tpu.memory_space<vmem>>, vector<1x32x256xf32>
    %29 = vector.shape_cast %28 : vector<1x32x256xf32> to vector<32x256xf32>
    %cst_15 = arith.constant dense<0.000000e+00> : vector<64x256xf32>
    %30 = tpu.matmul %27, %29, %cst_15 {dimension_numbers = #tpu.dot_dimension_numbers<[1], [0], [0], [1], [0, 0, 1, 1], [], []>} : vector<64x32xf32>, vector<32x256xf32>, vector<64x256xf32> -> vector<64x256xf32>
    %31 = arith.addf %24, %30 : vector<64x256xf32>
    %32 = vector.extract_strided_slice %31 {offsets = [0, 0], sizes = [64, 128], strides = [1, 1]} : vector<64x256xf32> to vector<64x128xf32>
    %33 = vector.extract_strided_slice %31 {offsets = [0, 128], sizes = [64, 128], strides = [1, 1]} : vector<64x256xf32> to vector<64x128xf32>
    %34 = arith.maximumf %32, %33 : vector<64x128xf32>
    %35 = vector.extract_strided_slice %34 {offsets = [1, 0], sizes = [63, 128], strides = [1, 1]} : vector<64x128xf32> to vector<63x128xf32>
    %36 = vector.extract_strided_slice %34 {offsets = [0, 0], sizes = [1, 128], strides = [1, 1]} : vector<64x128xf32> to vector<1x128xf32>
    %37 = tpu.concatenate %35, %36 in 0 : vector<63x128xf32>, vector<1x128xf32> -> vector<64x128xf32>
    %38 = arith.maximumf %34, %37 : vector<64x128xf32>
    %c0_16 = arith.constant 0 : index
    %c0_17 = arith.constant 0 : index
    %39 = vector.load %arg3[%c0_16, %c0_17] : memref<1x128xf32, #tpu.memory_space<vmem>>, vector<1x128xf32>
    %40 = vector.broadcast %39 : vector<1x128xf32> to vector<64x128xf32>
    %41 = arith.addf %38, %40 : vector<64x128xf32>
    %cst_18 = arith.constant 5.000000e-01 : f32
    %42 = vector.broadcast %cst_18 : f32 to vector<64x128xf32>
    %43 = arith.mulf %42, %41 : vector<64x128xf32>
    %44 = math.tanh %43 : vector<64x128xf32>
    %cst_19 = arith.constant 5.000000e-01 : f32
    %45 = vector.broadcast %cst_19 : f32 to vector<64x128xf32>
    %46 = arith.mulf %45, %44 : vector<64x128xf32>
    %cst_20 = arith.constant 5.000000e-01 : f32
    %47 = vector.broadcast %cst_20 : f32 to vector<64x128xf32>
    %48 = arith.addf %46, %47 : vector<64x128xf32>
    %c0_21 = arith.constant 0 : index
    %c0_22 = arith.constant 0 : index
    %c0_23 = arith.constant 0 : index
    %49 = vector.load %arg4[%c0_21, %c0_22, %c0_23] : memref<5x128x256xf32, #tpu.memory_space<vmem>>, vector<1x128x256xf32>
    %50 = vector.shape_cast %49 : vector<1x128x256xf32> to vector<128x256xf32>
    %cst_24 = arith.constant dense<0.000000e+00> : vector<64x256xf32>
    %51 = tpu.matmul %48, %50, %cst_24 {dimension_numbers = #tpu.dot_dimension_numbers<[1], [0], [0], [1], [0, 0, 1, 1], [], []>} : vector<64x128xf32>, vector<128x256xf32>, vector<64x256xf32> -> vector<64x256xf32>
    %52 = vector.extract_strided_slice %48 {offsets = [2, 0], sizes = [62, 128], strides = [1, 1]} : vector<64x128xf32> to vector<62x128xf32>
    %53 = vector.extract_strided_slice %48 {offsets = [0, 0], sizes = [2, 128], strides = [1, 1]} : vector<64x128xf32> to vector<2x128xf32>
    %54 = tpu.concatenate %52, %53 in 0 : vector<62x128xf32>, vector<2x128xf32> -> vector<64x128xf32>
    %c1_25 = arith.constant 1 : index
    %c0_26 = arith.constant 0 : index
    %c0_27 = arith.constant 0 : index
    %55 = vector.load %arg4[%c1_25, %c0_26, %c0_27] : memref<5x128x256xf32, #tpu.memory_space<vmem>>, vector<1x128x256xf32>
    %56 = vector.shape_cast %55 : vector<1x128x256xf32> to vector<128x256xf32>
    %cst_28 = arith.constant dense<0.000000e+00> : vector<64x256xf32>
    %57 = tpu.matmul %54, %56, %cst_28 {dimension_numbers = #tpu.dot_dimension_numbers<[1], [0], [0], [1], [0, 0, 1, 1], [], []>} : vector<64x128xf32>, vector<128x256xf32>, vector<64x256xf32> -> vector<64x256xf32>
    %58 = arith.addf %51, %57 : vector<64x256xf32>
    %59 = vector.extract_strided_slice %48 {offsets = [4, 0], sizes = [60, 128], strides = [1, 1]} : vector<64x128xf32> to vector<60x128xf32>
    %60 = vector.extract_strided_slice %48 {offsets = [0, 0], sizes = [4, 128], strides = [1, 1]} : vector<64x128xf32> to vector<4x128xf32>
    %61 = tpu.concatenate %59, %60 in 0 : vector<60x128xf32>, vector<4x128xf32> -> vector<64x128xf32>
    %c2_29 = arith.constant 2 : index
    %c0_30 = arith.constant 0 : index
    %c0_31 = arith.constant 0 : index
    %62 = vector.load %arg4[%c2_29, %c0_30, %c0_31] : memref<5x128x256xf32, #tpu.memory_space<vmem>>, vector<1x128x256xf32>
    %63 = vector.shape_cast %62 : vector<1x128x256xf32> to vector<128x256xf32>
    %cst_32 = arith.constant dense<0.000000e+00> : vector<64x256xf32>
    %64 = tpu.matmul %61, %63, %cst_32 {dimension_numbers = #tpu.dot_dimension_numbers<[1], [0], [0], [1], [0, 0, 1, 1], [], []>} : vector<64x128xf32>, vector<128x256xf32>, vector<64x256xf32> -> vector<64x256xf32>
    %65 = arith.addf %58, %64 : vector<64x256xf32>
    %66 = vector.extract_strided_slice %48 {offsets = [6, 0], sizes = [58, 128], strides = [1, 1]} : vector<64x128xf32> to vector<58x128xf32>
    %67 = vector.extract_strided_slice %48 {offsets = [0, 0], sizes = [6, 128], strides = [1, 1]} : vector<64x128xf32> to vector<6x128xf32>
    %68 = tpu.concatenate %66, %67 in 0 : vector<58x128xf32>, vector<6x128xf32> -> vector<64x128xf32>
    %c3_33 = arith.constant 3 : index
    %c0_34 = arith.constant 0 : index
    %c0_35 = arith.constant 0 : index
    %69 = vector.load %arg4[%c3_33, %c0_34, %c0_35] : memref<5x128x256xf32, #tpu.memory_space<vmem>>, vector<1x128x256xf32>
    %70 = vector.shape_cast %69 : vector<1x128x256xf32> to vector<128x256xf32>
    %cst_36 = arith.constant dense<0.000000e+00> : vector<64x256xf32>
    %71 = tpu.matmul %68, %70, %cst_36 {dimension_numbers = #tpu.dot_dimension_numbers<[1], [0], [0], [1], [0, 0, 1, 1], [], []>} : vector<64x128xf32>, vector<128x256xf32>, vector<64x256xf32> -> vector<64x256xf32>
    %72 = arith.addf %65, %71 : vector<64x256xf32>
    %73 = vector.extract_strided_slice %48 {offsets = [8, 0], sizes = [56, 128], strides = [1, 1]} : vector<64x128xf32> to vector<56x128xf32>
    %74 = vector.extract_strided_slice %48 {offsets = [0, 0], sizes = [8, 128], strides = [1, 1]} : vector<64x128xf32> to vector<8x128xf32>
    %75 = tpu.concatenate %73, %74 in 0 : vector<56x128xf32>, vector<8x128xf32> -> vector<64x128xf32>
    %c4_37 = arith.constant 4 : index
    %c0_38 = arith.constant 0 : index
    %c0_39 = arith.constant 0 : index
    %76 = vector.load %arg4[%c4_37, %c0_38, %c0_39] : memref<5x128x256xf32, #tpu.memory_space<vmem>>, vector<1x128x256xf32>
    %77 = vector.shape_cast %76 : vector<1x128x256xf32> to vector<128x256xf32>
    %cst_40 = arith.constant dense<0.000000e+00> : vector<64x256xf32>
    %78 = tpu.matmul %75, %77, %cst_40 {dimension_numbers = #tpu.dot_dimension_numbers<[1], [0], [0], [1], [0, 0, 1, 1], [], []>} : vector<64x128xf32>, vector<128x256xf32>, vector<64x256xf32> -> vector<64x256xf32>
    %79 = arith.addf %72, %78 : vector<64x256xf32>
    %80 = vector.extract_strided_slice %79 {offsets = [0, 0], sizes = [64, 128], strides = [1, 1]} : vector<64x256xf32> to vector<64x128xf32>
    %81 = vector.extract_strided_slice %79 {offsets = [0, 128], sizes = [64, 128], strides = [1, 1]} : vector<64x256xf32> to vector<64x128xf32>
    %82 = arith.maximumf %80, %81 : vector<64x128xf32>
    %83 = vector.extract_strided_slice %82 {offsets = [2, 0], sizes = [62, 128], strides = [1, 1]} : vector<64x128xf32> to vector<62x128xf32>
    %84 = vector.extract_strided_slice %82 {offsets = [0, 0], sizes = [2, 128], strides = [1, 1]} : vector<64x128xf32> to vector<2x128xf32>
    %85 = tpu.concatenate %83, %84 in 0 : vector<62x128xf32>, vector<2x128xf32> -> vector<64x128xf32>
    %86 = arith.maximumf %82, %85 : vector<64x128xf32>
    %c0_41 = arith.constant 0 : index
    %c0_42 = arith.constant 0 : index
    %87 = vector.load %arg5[%c0_41, %c0_42] : memref<1x128xf32, #tpu.memory_space<vmem>>, vector<1x128xf32>
    %88 = vector.broadcast %87 : vector<1x128xf32> to vector<64x128xf32>
    %89 = arith.addf %86, %88 : vector<64x128xf32>
    %cst_43 = arith.constant 5.000000e-01 : f32
    %90 = vector.broadcast %cst_43 : f32 to vector<64x128xf32>
    %91 = arith.mulf %90, %89 : vector<64x128xf32>
    %92 = math.tanh %91 : vector<64x128xf32>
    %cst_44 = arith.constant 5.000000e-01 : f32
    %93 = vector.broadcast %cst_44 : f32 to vector<64x128xf32>
    %94 = arith.mulf %93, %92 : vector<64x128xf32>
    %cst_45 = arith.constant 5.000000e-01 : f32
    %95 = vector.broadcast %cst_45 : f32 to vector<64x128xf32>
    %96 = arith.addf %94, %95 : vector<64x128xf32>
    %c0_46 = arith.constant 0 : index
    %c0_47 = arith.constant 0 : index
    %c0_48 = arith.constant 0 : index
    %97 = vector.load %arg6[%c0_46, %c0_47, %c0_48] : memref<5x128x128xf32, #tpu.memory_space<vmem>>, vector<1x128x128xf32>
    %98 = vector.shape_cast %97 : vector<1x128x128xf32> to vector<128x128xf32>
    %cst_49 = arith.constant dense<0.000000e+00> : vector<64x128xf32>
    %99 = tpu.matmul %96, %98, %cst_49 {dimension_numbers = #tpu.dot_dimension_numbers<[1], [0], [0], [1], [0, 0, 1, 1], [], []>} : vector<64x128xf32>, vector<128x128xf32>, vector<64x128xf32> -> vector<64x128xf32>
    %100 = vector.extract_strided_slice %96 {offsets = [4, 0], sizes = [60, 128], strides = [1, 1]} : vector<64x128xf32> to vector<60x128xf32>
    %101 = vector.extract_strided_slice %96 {offsets = [0, 0], sizes = [4, 128], strides = [1, 1]} : vector<64x128xf32> to vector<4x128xf32>
    %102 = tpu.concatenate %100, %101 in 0 : vector<60x128xf32>, vector<4x128xf32> -> vector<64x128xf32>
    %c1_50 = arith.constant 1 : index
    %c0_51 = arith.constant 0 : index
    %c0_52 = arith.constant 0 : index
    %103 = vector.load %arg6[%c1_50, %c0_51, %c0_52] : memref<5x128x128xf32, #tpu.memory_space<vmem>>, vector<1x128x128xf32>
    %104 = vector.shape_cast %103 : vector<1x128x128xf32> to vector<128x128xf32>
    %cst_53 = arith.constant dense<0.000000e+00> : vector<64x128xf32>
    %105 = tpu.matmul %102, %104, %cst_53 {dimension_numbers = #tpu.dot_dimension_numbers<[1], [0], [0], [1], [0, 0, 1, 1], [], []>} : vector<64x128xf32>, vector<128x128xf32>, vector<64x128xf32> -> vector<64x128xf32>
    %106 = arith.addf %99, %105 : vector<64x128xf32>
    %107 = vector.extract_strided_slice %96 {offsets = [8, 0], sizes = [56, 128], strides = [1, 1]} : vector<64x128xf32> to vector<56x128xf32>
    %108 = vector.extract_strided_slice %96 {offsets = [0, 0], sizes = [8, 128], strides = [1, 1]} : vector<64x128xf32> to vector<8x128xf32>
    %109 = tpu.concatenate %107, %108 in 0 : vector<56x128xf32>, vector<8x128xf32> -> vector<64x128xf32>
    %c2_54 = arith.constant 2 : index
    %c0_55 = arith.constant 0 : index
    %c0_56 = arith.constant 0 : index
    %110 = vector.load %arg6[%c2_54, %c0_55, %c0_56] : memref<5x128x128xf32, #tpu.memory_space<vmem>>, vector<1x128x128xf32>
    %111 = vector.shape_cast %110 : vector<1x128x128xf32> to vector<128x128xf32>
    %cst_57 = arith.constant dense<0.000000e+00> : vector<64x128xf32>
    %112 = tpu.matmul %109, %111, %cst_57 {dimension_numbers = #tpu.dot_dimension_numbers<[1], [0], [0], [1], [0, 0, 1, 1], [], []>} : vector<64x128xf32>, vector<128x128xf32>, vector<64x128xf32> -> vector<64x128xf32>
    %113 = arith.addf %106, %112 : vector<64x128xf32>
    %114 = vector.extract_strided_slice %96 {offsets = [12, 0], sizes = [52, 128], strides = [1, 1]} : vector<64x128xf32> to vector<52x128xf32>
    %115 = vector.extract_strided_slice %96 {offsets = [0, 0], sizes = [12, 128], strides = [1, 1]} : vector<64x128xf32> to vector<12x128xf32>
    %116 = tpu.concatenate %114, %115 in 0 : vector<52x128xf32>, vector<12x128xf32> -> vector<64x128xf32>
    %c3_58 = arith.constant 3 : index
    %c0_59 = arith.constant 0 : index
    %c0_60 = arith.constant 0 : index
    %117 = vector.load %arg6[%c3_58, %c0_59, %c0_60] : memref<5x128x128xf32, #tpu.memory_space<vmem>>, vector<1x128x128xf32>
    %118 = vector.shape_cast %117 : vector<1x128x128xf32> to vector<128x128xf32>
    %cst_61 = arith.constant dense<0.000000e+00> : vector<64x128xf32>
    %119 = tpu.matmul %116, %118, %cst_61 {dimension_numbers = #tpu.dot_dimension_numbers<[1], [0], [0], [1], [0, 0, 1, 1], [], []>} : vector<64x128xf32>, vector<128x128xf32>, vector<64x128xf32> -> vector<64x128xf32>
    %120 = arith.addf %113, %119 : vector<64x128xf32>
    %121 = vector.extract_strided_slice %96 {offsets = [16, 0], sizes = [48, 128], strides = [1, 1]} : vector<64x128xf32> to vector<48x128xf32>
    %122 = vector.extract_strided_slice %96 {offsets = [0, 0], sizes = [16, 128], strides = [1, 1]} : vector<64x128xf32> to vector<16x128xf32>
    %123 = tpu.concatenate %121, %122 in 0 : vector<48x128xf32>, vector<16x128xf32> -> vector<64x128xf32>
    %c4_62 = arith.constant 4 : index
    %c0_63 = arith.constant 0 : index
    %c0_64 = arith.constant 0 : index
    %124 = vector.load %arg6[%c4_62, %c0_63, %c0_64] : memref<5x128x128xf32, #tpu.memory_space<vmem>>, vector<1x128x128xf32>
    %125 = vector.shape_cast %124 : vector<1x128x128xf32> to vector<128x128xf32>
    %cst_65 = arith.constant dense<0.000000e+00> : vector<64x128xf32>
    %126 = tpu.matmul %123, %125, %cst_65 {dimension_numbers = #tpu.dot_dimension_numbers<[1], [0], [0], [1], [0, 0, 1, 1], [], []>} : vector<64x128xf32>, vector<128x128xf32>, vector<64x128xf32> -> vector<64x128xf32>
    %127 = arith.addf %120, %126 : vector<64x128xf32>
    %128 = vector.extract_strided_slice %127 {offsets = [0, 0], sizes = [1, 128], strides = [1, 1]} : vector<64x128xf32> to vector<1x128xf32>
    %129 = vector.extract_strided_slice %127 {offsets = [32, 0], sizes = [1, 128], strides = [1, 1]} : vector<64x128xf32> to vector<1x128xf32>
    %130 = tpu.concatenate %128, %129 in 0 : vector<1x128xf32>, vector<1x128xf32> -> vector<2x128xf32>
    %c0_66 = arith.constant 0 : index
    %c0_67 = arith.constant 0 : index
    %131 = vector.load %arg7[%c0_66, %c0_67] : memref<1x128xf32, #tpu.memory_space<vmem>>, vector<1x128xf32>
    %132 = vector.broadcast %131 : vector<1x128xf32> to vector<2x128xf32>
    %133 = arith.addf %130, %132 : vector<2x128xf32>
    %cst_68 = arith.constant 5.000000e-01 : f32
    %134 = vector.broadcast %cst_68 : f32 to vector<2x128xf32>
    %135 = arith.mulf %134, %133 : vector<2x128xf32>
    %136 = math.tanh %135 : vector<2x128xf32>
    %cst_69 = arith.constant 5.000000e-01 : f32
    %137 = vector.broadcast %cst_69 : f32 to vector<2x128xf32>
    %138 = arith.mulf %137, %136 : vector<2x128xf32>
    %cst_70 = arith.constant 5.000000e-01 : f32
    %139 = vector.broadcast %cst_70 : f32 to vector<2x128xf32>
    %140 = arith.addf %138, %139 : vector<2x128xf32>
    %c0_71 = arith.constant 0 : index
    %c0_72 = arith.constant 0 : index
    %141 = vector.load %arg8[%c0_71, %c0_72] : memref<128x128xf32, #tpu.memory_space<vmem>>, vector<128x128xf32>
    %cst_73 = arith.constant dense<0.000000e+00> : vector<2x128xf32>
    %142 = tpu.matmul %140, %141, %cst_73 {dimension_numbers = #tpu.dot_dimension_numbers<[1], [0], [0], [1], [0, 0, 1, 1], [], []>} : vector<2x128xf32>, vector<128x128xf32>, vector<2x128xf32> -> vector<2x128xf32>
    %c0_74 = arith.constant 0 : index
    %c0_75 = arith.constant 0 : index
    %143 = vector.load %arg9[%c0_74, %c0_75] : memref<1x128xf32, #tpu.memory_space<vmem>>, vector<1x128xf32>
    %144 = vector.broadcast %143 : vector<1x128xf32> to vector<2x128xf32>
    %145 = arith.addf %142, %144 : vector<2x128xf32>
    %c0_76 = arith.constant 0 : index
    %c0_77 = arith.constant 0 : index
    %146 = vector.load %arg10[%c0_76, %c0_77] : memref<2x128xf32, #tpu.memory_space<vmem>>, vector<2x128xf32>
    tpu.vector_store %arg10[%c0_76, %c0_77], %145 {strides = array<i32>} : memref<2x128xf32, #tpu.memory_space<vmem>>, vector<2x128xf32>,
    return
  }
  func.func @transform_0(%arg0: i32) -> (i32, i32) {
    %c0_i32 = arith.constant 0 : i32
    %c0_i32_0 = arith.constant 0 : i32
    return %arg0, %c0_i32 : i32, i32
  }
  func.func @transform_1(%arg0: i32) -> (i32, i32, i32) {
    %c0_i32 = arith.constant 0 : i32
    %c0_i32_0 = arith.constant 0 : i32
    %c0_i32_1 = arith.constant 0 : i32
    %c0_i32_2 = arith.constant 0 : i32
    return %c0_i32, %c0_i32_0, %c0_i32_1 : i32, i32, i32
  }
  func.func @transform_2(%arg0: i32) -> (i32, i32) {
    %c0_i32 = arith.constant 0 : i32
    %c0_i32_0 = arith.constant 0 : i32
    %c0_i32_1 = arith.constant 0 : i32
    return %c0_i32, %c0_i32_0 : i32, i32
  }
  func.func @transform_3(%arg0: i32) -> (i32, i32, i32) {
    %c0_i32 = arith.constant 0 : i32
    %c0_i32_0 = arith.constant 0 : i32
    %c0_i32_1 = arith.constant 0 : i32
    %c0_i32_2 = arith.constant 0 : i32
    return %c0_i32, %c0_i32_0, %c0_i32_1 : i32, i32, i32
  }
  func.func @transform_4(%arg0: i32) -> (i32, i32) {
    %c0_i32 = arith.constant 0 : i32
    %c0_i32_0 = arith.constant 0 : i32
    %c0_i32_1 = arith.constant 0 : i32
    return %c0_i32, %c0_i32_0 : i32, i32
  }
  func.func @transform_5(%arg0: i32) -> (i32, i32, i32) {
    %c0_i32 = arith.constant 0 : i32
    %c0_i32_0 = arith.constant 0 : i32
    %c0_i32_1 = arith.constant 0 : i32
    %c0_i32_2 = arith.constant 0 : i32
    return %c0_i32, %c0_i32_0, %c0_i32_1 : i32, i32, i32
  }
  func.func @transform_6(%arg0: i32) -> (i32, i32) {
    %c0_i32 = arith.constant 0 : i32
    %c0_i32_0 = arith.constant 0 : i32
    %c0_i32_1 = arith.constant 0 : i32
    return %c0_i32, %c0_i32_0 : i32, i32
  }
  func.func @transform_7(%arg0: i32) -> (i32, i32) {
    %c0_i32 = arith.constant 0 : i32
    %c0_i32_0 = arith.constant 0 : i32
    %c0_i32_1 = arith.constant 0 : i32
    return %c0_i32, %c0_i32_0 : i32, i32
  }
  func.func @transform_8(%arg0: i32) -> (i32, i32) {
    %c0_i32 = arith.constant 0 : i32
    %c0_i32_0 = arith.constant 0 : i32
    %c0_i32_1 = arith.constant 0 : i32
    return %c0_i32, %c0_i32_0 : i32, i32
  }
  func.func @transform_9(%arg0: i32) -> (i32, i32) {
    %c0_i32 = arith.constant 0 : i32
    %c0_i32_0 = arith.constant 0 : i32
    return %arg0, %c0_i32 : i32, i32
  }
}

</mosaic_0001>

<bundles_post_ra>
// kernel: lenet_forward.1
= control target key start
LH: loop header
LB: loop body
LE: loop exit
PB: predicated region body
PF: predicated region fallthrough
CT: control target
= control target key end

     0   :  { %14 = vsyncpa [#allocation3], 0  ;;  %s4530_s0 = inlined_call_operand.hbm [shape: f32[64,32], index: 0, kind: input, shape index: {}]   ;;  %s4531_s1 = inlined_call_operand.hbm [shape: f32[5,32,256], index: 1, kind: input, shape index: {}]   ;;  %s4532_s2 = inlined_call_operand.vmem [shape: f32[1,128], index: 2, kind: input, shape index: {}]   ;;  %s4533_s3 = inlined_call_operand.hbm [shape: f32[5,128,256], index: 3, kind: input, shape index: {}]   ;;  %s4534_s4 = inlined_call_operand.vmem [shape: f32[1,128], index: 4, kind: input, shape index: {}]   ;;  %s4535_s5 = inlined_call_operand.hbm [shape: f32[5,128,128], index: 5, kind: input, shape index: {}]   ;;  %s4536_s6 = inlined_call_operand.vmem [shape: f32[1,128], index: 6, kind: input, shape index: {}]   ;;  %s4537_s7 = inlined_call_operand.hbm [shape: f32[128,128], index: 7, kind: input, shape index: {}]   ;;  %s4538_s8 = inlined_call_operand.vmem [shape: f32[1,128], index: 8, kind: input, shape index: {}]   ;;  %s4539_s9 = inlined_call_operand.hbm [shape: f32[2,128], index: 9, kind: output, shape index: {}]  }
   0x1   :  { %15 = vsyncpa [#allocation6], 0 }
   0x2   :  { %16 = vsyncpa [#allocation9], 0 }
   0x3   :  { %17 = vsyncpa [#allocation4], 0  ;;  %s3885_s30 = smov [#allocation5]   ;;  %s3745_s13 = scalar_lea.hbm %s4531_s1, 5120 }
   0x4   :  { %s35_s10 = sshll.u32 %s3885_s30, 4  ;;  %p3746_p0 = scmp.ne.s32.totalorder %s4531_s1, %s3745_s13  ;;  %s36_s10 = int_to_ptr.vmem [resolvable:$true] %s35_s10 }
   0x5   :  { %p3749_p1 = scmp.lt.u32.totalorder %s3745_s13, %s4531_s1 }
   0x7   :  { %p3751_p2 = pnand %p3749_p1, %p3746_p0 }
   0x9   :  { %3754 = shalt.err (!%p3751_p2)
}
   0xa   :  { %s3755_s18 = scalar_lea.vmem %s36_s10, 5120  ;;  %p3760_p4 = scmp.lt.s32.totalorder %s36_s10, %s36_s10 }
   0xb   :  { %p3756_p3 = scmp.ne.s32.totalorder %s36_s10, %s3755_s18  ;;  %p3761_p5 = scmp.lt.s32.totalorder %s3755_s18, %s3755_s18 }
   0xd   :  { %p3762_p6 = por %p3761_p5, %p3760_p4 }
   0xf   :  { %p3763_p7 = pnand %p3762_p6, %p3756_p3 }
  0x11   :  { %3766 = shalt.err (!%p3763_p7)
}
  0x12   :  { %s3886_s19 = smov 256   ;;  %s3887_s20 = smov 16  }
  0x13   :  { %41 = dma.hbm_to_vmem [thread:$0]  %s4531_s1, 5120, %s36_s10, [#allocation6], %s3886_s19, %s3886_s19, %s3887_s20  }
  0x14   :  { %s3888_s23 = smov [#allocation8]   ;;  %s3889_s25 = smov [#allocation2]  }
  0x15   :  { %s63_s24 = sshll.u32 %s3888_s23, 4  ;;  %s23_s26 = sshll.u32 %s3889_s25, 4  ;;  %s64_s24 = int_to_ptr.vmem [resolvable:$true] %s63_s24  ;;  %s24_s26 = int_to_ptr.vmem [resolvable:$true] %s23_s26 }
  0x16   :  { %s3767_s29 = scalar_lea.hbm %s4535_s5, 10240 }
  0x17   :  { %p3768_p8 = scmp.ne.s32.totalorder %s4535_s5, %s3767_s29  ;;  %p3771_p9 = scmp.lt.u32.totalorder %s3767_s29, %s4535_s5 }
  0x19   :  { %p3773_p10 = pnand %p3771_p9, %p3768_p8 }
  0x1b   :  { %3776 = shalt.err (!%p3773_p10)
}
  0x1c   :  { %s3777_s1 = scalar_lea.vmem %s64_s24, 10240  ;;  %p3782_p12 = scmp.lt.s32.totalorder %s64_s24, %s64_s24 }
  0x1d   :  { %p3778_p11 = scmp.ne.s32.totalorder %s64_s24, %s3777_s1  ;;  %p3783_p13 = scmp.lt.s32.totalorder %s3777_s1, %s3777_s1 }
  0x1f   :  { %p3784_p0 = por %p3783_p13, %p3782_p12 }
  0x21   :  { %p3785_p1 = pnand %p3784_p0, %p3778_p11 }
  0x23   :  { %3788 = shalt.err (!%p3785_p1)
}
  0x24   :  { %s3890_s10 = smov 128   ;;  %s3891_s14 = smov 8  }
  0x25   :  { %69 = dma.hbm_to_vmem [thread:$0]  %s4535_s5, 10240, %s64_s24, [#allocation9], %s3890_s10, %s3890_s10, %s3891_s14  }
  0x26   :  { %s3789_s21 = scalar_lea.hbm %s4530_s0, 1024 }
  0x27   :  { %p3790_p2 = scmp.ne.s32.totalorder %s4530_s0, %s3789_s21  ;;  %p3793_p3 = scmp.lt.u32.totalorder %s3789_s21, %s4530_s0 }
  0x29   :  { %p3795_p4 = pnand %p3793_p3, %p3790_p2 }
  0x2b   :  { %3798 = shalt.err (!%p3795_p4)
}
  0x2c   :  { %s3799_s28 = scalar_lea.vmem %s24_s26, 1024  ;;  %p3804_p6 = scmp.lt.s32.totalorder %s24_s26, %s24_s26 }
  0x2d   :  { %p3800_p5 = scmp.ne.s32.totalorder %s24_s26, %s3799_s28  ;;  %p3805_p7 = scmp.lt.s32.totalorder %s3799_s28, %s3799_s28 }
  0x2f   :  { %p3806_p8 = por %p3805_p7, %p3804_p6 }
  0x31   :  { %p3807_p9 = pnand %p3806_p8, %p3800_p5 }
  0x33   :  { %3810 = shalt.err (!%p3807_p9)
}
  0x34   :  { %29 = dma.hbm_to_vmem [thread:$0]  %s4530_s0, 1024, %s24_s26, [#allocation3], %s3890_s10, %s3890_s10, %s3891_s14  }
  0x35   :  { %s3892_s29 = smov [#allocation7]   ;;  %s3893_s11 = smov [#allocation10]  }
  0x36   :  { %s49_s30 = sshll.u32 %s3892_s29, 4  ;;  %s77_s12 = sshll.u32 %s3893_s11, 4  ;;  %s50_s30 = int_to_ptr.vmem [resolvable:$true] %s49_s30  ;;  %s78_s12 = int_to_ptr.vmem [resolvable:$true] %s77_s12 }
  0x37   :  { %s3811_s15 = scalar_lea.hbm %s4533_s3, 20480 }
  0x38   :  { %p3812_p10 = scmp.ne.s32.totalorder %s4533_s3, %s3811_s15  ;;  %p3815_p11 = scmp.lt.u32.totalorder %s3811_s15, %s4533_s3 }
  0x3a   :  { %p3817_p12 = pnand %p3815_p11, %p3812_p10 }
  0x3c   :  { %3820 = shalt.err (!%p3817_p12)
}
  0x3d   :  { %s3821_s0 = scalar_lea.vmem %s50_s30, 20480  ;;  %p3826_p0 = scmp.lt.s32.totalorder %s50_s30, %s50_s30 }
  0x3e   :  { %p3822_p13 = scmp.ne.s32.totalorder %s50_s30, %s3821_s0  ;;  %p3827_p1 = scmp.lt.s32.totalorder %s3821_s0, %s3821_s0 }
  0x40   :  { %p3828_p2 = por %p3827_p1, %p3826_p0 }
  0x42   :  { %p3829_p3 = pnand %p3828_p2, %p3822_p13 }
  0x44   :  { %3832 = shalt.err (!%p3829_p3)
}
  0x45   :  { %55 = dma.hbm_to_vmem [thread:$0]  %s4533_s3, 20480, %s50_s30, [#allocation6], %s3886_s19, %s3886_s19, %s3887_s20  }
  0x46   :  { %s3833_s27 = scalar_lea.hbm %s4537_s7, 2048 }
  0x47   :  { %p3834_p4 = scmp.ne.s32.totalorder %s4537_s7, %s3833_s27  ;;  %p3837_p5 = scmp.lt.u32.totalorder %s3833_s27, %s4537_s7 }
  0x49   :  { %p3839_p6 = pnand %p3837_p5, %p3834_p4 }
  0x4b   :  { %3842 = shalt.err (!%p3839_p6)
}
  0x4c   :  { %s3843_s11 = scalar_lea.vmem %s78_s12, 2048  ;;  %p3848_p8 = scmp.lt.s32.totalorder %s78_s12, %s78_s12 }
  0x4d   :  { %p3844_p7 = scmp.ne.s32.totalorder %s78_s12, %s3843_s11  ;;  %p3849_p9 = scmp.lt.s32.totalorder %s3843_s11, %s3843_s11 }
  0x4f   :  { %p3850_p10 = por %p3849_p9, %p3848_p8 }
  0x51   :  { %p3851_p11 = pnand %p3850_p10, %p3844_p7 }
  0x53   :  { %3854 = shalt.err (!%p3851_p11)
}
  0x54   :  { %83 = dma.hbm_to_vmem [thread:$0]  %s4537_s7, 2048, %s78_s12, [#allocation9], %s3890_s10, %s3890_s10, %s3891_s14  }
  0x55   :  { %3877 = dma.done.wait [#allocation3], 1024  }
  0x56   :  { %3878 = vsyncadd [#allocation3], 4294966272 }
  0x57   :  { %3879 = dma.done.wait [#allocation6], 25600  }
  0x58   :  { %3880 = vsyncadd [#allocation6], 4294941696 }
  0x59   :  { %3881 = dma.done.wait [#allocation9], 12288  }
  0x5a   :  { %3882 = vsyncadd [#allocation9], 4294955008  ;;  %v3894_v0 = vmov 0.0   ;;  %v146_v1 = vld [vmem:[#allocation5 + $0x48] sm:$0xff]  ;;  %v148_v2 = vld [vmem:[#allocation5 + $0x58] sm:$0xff]  ;;  %vm125_vm0 = vcmask 1046528  }
  0x5b   :  { %235 = vmatprep.mubr.f32.mxu1 %v3894_v0  ;;  %522 = vmatprep.mubr.f32.mxu0 %v3894_v0  ;;  %v434_v3 = vld [vmem:[#allocation5 + $0x88] sm:$0xff]  ;;  %v3170_v4 = vpack.c.bf16 %v148_v2, %v146_v1  ;;  %v436_v5 = vld [vmem:[#allocation5 + $0x98] sm:$0xff]  ;;  %v145_v6 = vld [vmem:[#allocation5 + $0x40] sm:$0xff]  ;;  %vm413_vm1 = vcmask 1045504   ;;  %vm153_vm2 = vcmask 261120   ;;  %vm761_vm3 = vcmask 1043456  }
  0x5c   :  { %v147_v7 = vld [vmem:[#allocation5 + $0x50] sm:$0xff]  ;;  %v3186_v8 = vpack.c.bf16 %v436_v5, %v434_v3  ;;  %v433_v10 = vld [vmem:[#allocation5 + $0x80] sm:$0xff]  ;;  %v150_v12 = vld [vmem:[#allocation5 + $0x68] sm:$0xff]  ;;  %vm587_vm4 = vcmask 1044480   ;;  %vm1542_vm5 = vcmask 1041408   ;;  %vm3896_vm6 = vmmov 0  }
  0x5d   :  { %v3172_v9 = vpack.c.bf16 %v147_v7, %v145_v6  ;;  %v435_v11 = vld [vmem:[#allocation5 + $0x90] sm:$0xff]  ;;  %3171 = vmatprep.subr.bf16.mxu1 %v3170_v4  ;;  %v152_v14 = vld [vmem:[#allocation5 + $0x78] sm:$0xff]  ;;  %v438_v15 = vld [vmem:[#allocation5 + $0xa8] sm:$0xff]  ;;  %vm2609_vm7 = vcmask 1040384   ;;  %s3897_s13 = smov [#allocation11]  }
  0x5e   :  { %v3188_v13 = vpack.c.bf16 %v435_v11, %v433_v10  ;;  %v440_v16 = vld [vmem:[#allocation5 + $0xb8] sm:$0xff]  ;;  %3187 = vmatprep.subr.bf16.mxu0 %v3186_v8  ;;  %v3174_v17 = vpack.c.bf16 %v152_v14, %v150_v12  ;;  %v149_v19 = vld [vmem:[#allocation5 + $0x60] sm:$0xff]  ;;  %v151_v20 = vld [vmem:[#allocation5 + $0x70] sm:$0xff]  ;;  %s2723_s1 = sshll.u32 %s3897_s13, 4  ;;  %s2724_s1 = int_to_ptr.vmem [resolvable:$true] %s2723_s1 }
  0x5f   :  { %3173 = vmatpush1.bf16.msra.mxu1 %v3172_v9  ;;  %v3190_v18 = vpack.c.bf16 %v440_v16, %v438_v15  ;;  %v437_v21 = vld [vmem:[#allocation5 + $0xa0] sm:$0xff]  ;;  %v3176_v22 = vpack.c.bf16 %v151_v20, %v149_v19  ;;  %v439_v23 = vld [vmem:[#allocation5 + $0xb0] sm:$0xff]  ;;  %v4027_v25 = vld [vmem:[#allocation2 + $0x8] sm:$0xff]  ;;  %p3860_p13 = scmp.lt.s32.totalorder %s2724_s1, %s2724_s1 }
  0x60   :  { %3189 = vmatpush1.bf16.msra.mxu0 %v3188_v13  ;;  %v4025_v24 = vld [vmem:[#allocation2] sm:$0xff]  ;;  %3175 = vmatprep.subr.bf16.mxu1 %v3174_v17  ;;  %v3192_v26 = vpack.c.bf16 %v439_v23, %v437_v21  ;;  %v127_v28 = vrot.slane %v4027_v25, 1  ;;  %v608_v30 = vld [vmem:[#allocation5 + $0xc8] sm:$0xff]  ;;  %v610_v31 = vld [vmem:[#allocation5 + $0xd8] sm:$0xff]  ;;  %v415_v33 = vrot.slane %v4027_v25, 2  ;;  %v763_v14 = vrot.slane %v4027_v25, 4 }
  0x61   :  { %3191 = vmatprep.subr.bf16.mxu0 %v3190_v18  ;;  %v126_v27 = vrot.slane %v4025_v24, 1  ;;  %v414_v29 = vrot.slane %v4025_v24, 2  ;;  %v607_v32 = vld [vmem:[#allocation5 + $0xc0] sm:$0xff]  ;;  %v3194_v34 = vpack.c.bf16 %v610_v31, %v608_v30  ;;  %v609_v35 = vld [vmem:[#allocation5 + $0xd0] sm:$0xff]  ;;  %v4043_v42 = vld [vmem:[#allocation2 + $0x18] sm:$0xff]  ;;  %v762_v13 = vrot.slane %v4025_v24, 4 }
  0x62   :  { %v4033_v36 = vld [vmem:[#allocation2 + $0x10] sm:$0xff]  ;;  %v3196_v40 = vpack.c.bf16 %v609_v35, %v607_v32  ;;  %v612_v43 = vld [vmem:[#allocation5 + $0xe8] sm:$0xff]  ;;  %v614_v44 = vld [vmem:[#allocation5 + $0xf8] sm:$0xff]  ;;  %v131_v50 = vrot.slane %v4043_v42, 1  ;;  %v419_v53 = vrot.slane %v4043_v42, 2 }
  0x63   :  { %3177 = vmatpush1.bf16.msra.mxu1 %v3176_v22  ;;  %v128_v37 = vsel %vm125_vm0, %v126_v27, %v127_v28  ;;  %v129_v38 = vrot.slane %v4033_v36, 1  ;;  %v416_v39 = vsel %vm413_vm1, %v414_v29, %v415_v33  ;;  %v417_v41 = vrot.slane %v4033_v36, 2  ;;  %v611_v45 = vld [vmem:[#allocation5 + $0xe0] sm:$0xff]  ;;  %v613_v46 = vld [vmem:[#allocation5 + $0xf0] sm:$0xff]  ;;  %v110_v47 = vld [vmem:[#allocation5 + $0x8] sm:$0xff] }
  0x64   :  { %3193 = vmatpush1.bf16.msra.mxu0 %v3192_v26  ;;  %v112_v48 = vld [vmem:[#allocation5 + $0x18] sm:$0xff]  ;;  %v3198_v51 = vpack.c.bf16 %v614_v44, %v612_v43  ;;  %v4053_v54 = vld [vmem:[#allocation2 + $0x20] sm:$0xff]  ;;  %v4055_v55 = vld [vmem:[#allocation2 + $0x28] sm:$0xff]  ;;  %v3200_v56 = vpack.c.bf16 %v613_v46, %v611_v45  ;;  %v765_v19 = vrot.slane %v4033_v36, 4  ;;  %v4082_v21 = vsel %vm761_vm3, %v762_v13, %v763_v14 }
  0x65   :  { %3195 = vmatprep.subr.bf16.mxu0 %v3194_v34  ;;  %v130_v49 = vsel %vm125_vm0, %v127_v28, %v129_v38  ;;  %v418_v52 = vsel %vm413_vm1, %v415_v33, %v417_v41  ;;  %v109_v57 = vld [vmem:[#allocation5] sm:$0xff]  ;;  %v3178_v58 = vpack.c.bf16 %v112_v48, %v110_v47  ;;  %v111_v59 = vld [vmem:[#allocation5 + $0x10] sm:$0xff]  ;;  %v782_v60 = vld [vmem:[#allocation5 + $0x108] sm:$0xff]  ;;  %v132_v1 = vsel %vm125_vm0, %v129_v38, %v131_v50 }
  0x66   :  { %2734 = vmatmul.mubr.msk.f32.vlgmr.msra.gmra.mrb[0].mxu1 %vm153_vm2, %v128_v37  ;;  %v784_v61 = vld [vmem:[#allocation5 + $0x118] sm:$0xff]  ;;  %v114_v62 = vld [vmem:[#allocation5 + $0x28] sm:$0xff]  ;;  %v133_v2 = vrot.slane %v4053_v54, 1  ;;  %v421_v3 = vrot.slane %v4053_v54, 2  ;;  %v420_v4 = vsel %vm413_vm1, %v417_v41, %v419_v53  ;;  %v135_v5 = vrot.slane %v4055_v55, 1  ;;  %v113_v9 = vld [vmem:[#allocation5 + $0x20] sm:$0xff] }
  0x67   :  { %2750 = vmatmul.mubr.msk.f32.vlgmr.msra.gmra.mrb[0].mxu0 %vm153_vm2, %v416_v39  ;;  %241 = vmatprep.mubr.f32.mxu1 %v3894_v0  ;;  %v116_v63 = vld [vmem:[#allocation5 + $0x38] sm:$0xff]  ;;  %v3180_v6 = vpack.c.bf16 %v111_v59, %v109_v57  ;;  %v3202_v7 = vpack.c.bf16 %v784_v61, %v782_v60  ;;  %v115_v10 = vld [vmem:[#allocation5 + $0x30] sm:$0xff]  ;;  %v423_v11 = vrot.slane %v4055_v55, 2  ;;  %v767_v22 = vrot.slane %v4043_v42, 4  ;;  %v786_v57 = vld [vmem:[#allocation5 + $0x128] sm:$0xff] }
  0x68   :  { %3197 = vmatpush1.bf16.msra.mxu0 %v3196_v40  ;;  %528 = vmatprep.mubr.f32.mxu0 %v3894_v0  ;;  %v3182_v8 = vpack.c.bf16 %v116_v63, %v114_v62  ;;  %v134_v12 = vsel %vm125_vm0, %v131_v50, %v133_v2  ;;  %v422_v15 = vsel %vm413_vm1, %v419_v53, %v421_v3  ;;  %v4076_v17 = vld [vmem:[#allocation2 + $0x30] sm:$0xff]  ;;  %v4079_v20 = vld [vmem:[#allocation2 + $0x38] sm:$0xff]  ;;  %v769_v23 = vrot.slane %v4053_v54, 4  ;;  %v781_v53 = vld [vmem:[#allocation5 + $0x100] sm:$0xff] }
  0x69   :  { %3199 = vmatprep.subr.bf16.mxu0 %v3198_v51  ;;  %3179 = vmatprep.subr.bf16.mxu1 %v3178_v58  ;;  %v136_v16 = vsel %vm125_vm0, %v133_v2, %v135_v5  ;;  %v3184_v18 = vpack.c.bf16 %v115_v10, %v113_v9  ;;  %v771_v26 = vrot.slane %v4055_v55, 4  ;;  %v424_v28 = vsel %vm413_vm1, %v421_v3, %v423_v11  ;;  %v788_v58 = vld [vmem:[#allocation5 + $0x138] sm:$0xff]  ;;  %v785_v61 = vld [vmem:[#allocation5 + $0x120] sm:$0xff]  ;;  %v787_v62 = vld [vmem:[#allocation5 + $0x130] sm:$0xff] }
  0x6a   :  { %2735 = vmatmul.mubr.msk.f32.gmra.mrb[2].mxu1 %vm153_vm2, %v130_v49  ;;  %v4090_v30 = vsel %vm761_vm3, %v763_v14, %v765_v19  ;;  %v773_v31 = vrot.slane %v4076_v17, 4  ;;  %v775_v32 = vrot.slane %v4079_v20, 4  ;;  %v137_v33 = vrot.slane %v4076_v17, 1  ;;  %v1097_v10 = vld [vmem:[#allocation7 + $0x100] sm:$0xff]  ;;  %v1104_v14 = vld [vmem:[#allocation7 + $0x138] sm:$0xff] }
  0x6b   :  { %2751 = vmatmul.mubr.msk.f32.gmra.mrb[2].mxu0 %vm153_vm2, %v418_v52  ;;  %247 = vmatprep.mubr.f32.mxu1 %v3894_v0  ;;  %v4098_v34 = vsel %vm761_vm3, %v765_v19, %v767_v22  ;;  %v4101_v35 = vsel %vm761_vm3, %v767_v22, %v769_v23  ;;  %v4104_v37 = vsel %vm761_vm3, %v769_v23, %v771_v26  ;;  %v425_v38 = vrot.slane %v4076_v17, 2  ;;  %v1106_v19 = vld [vmem:[#allocation7 + $0x148] sm:$0xff]  ;;  %v1105_v22 = vld [vmem:[#allocation7 + $0x140] sm:$0xff]  ;;  %v1107_v23 = vld [vmem:[#allocation7 + $0x150] sm:$0xff] }
  0x6c   :  { %534 = vmatprep.mubr.f32.mxu0 %v3894_v0  ;;  %3201 = vmatpush1.bf16.msra.mxu0 %v3200_v56  ;;  %v4109_v39 = vsel %vm761_vm3, %v771_v26, %v773_v31  ;;  %v4112_v40 = vsel %vm761_vm3, %v773_v31, %v775_v32  ;;  %v4115_v41 = vsel %vm761_vm3, %v775_v32, %v762_v13  ;;  %v139_v44 = vrot.slane %v4079_v20, 1  ;;  %v783_v56 = vld [vmem:[#allocation5 + $0x110] sm:$0xff]  ;;  %v1102_v13 = vld [vmem:[#allocation7 + $0x128] sm:$0xff]  ;;  %v1109_v32 = vld [vmem:[#allocation7 + $0x160] sm:$0xff] }
  0x6d   :  { %3203 = vmatprep.subr.bf16.mxu0 %v3202_v7  ;;  %3181 = vmatpush1.bf16.msra.mxu1 %v3180_v6  ;;  %v138_v43 = vsel %vm125_vm0, %v135_v5, %v137_v33  ;;  %v426_v45 = vsel %vm413_vm1, %v423_v11, %v425_v38  ;;  %v427_v46 = vrot.slane %v4079_v20, 2  ;;  %v588_v51 = vrot.slane %v4025_v24, 3  ;;  %v1099_v11 = vld [vmem:[#allocation7 + $0x110] sm:$0xff] }
  0x6e   :  { %2736 = vmatmul.mubr.msk.f32.gmra.mrb[4].mxu1 %vm153_vm2, %v132_v1  ;;  %3183 = vmatprep.subr.bf16.mxu1 %v3182_v8  ;;  %v140_v47 = vsel %vm125_vm0, %v137_v33, %v139_v44  ;;  %v143_v49 = vsel %vm125_vm0, %v139_v44, %v126_v27  ;;  %v589_v52 = vrot.slane %v4027_v25, 3  ;;  %v591_v59 = vrot.slane %v4033_v36, 3  ;;  %v1100_v8 = vld [vmem:[#allocation7 + $0x118] sm:$0xff]  ;;  %v1111_v33 = vld [vmem:[#allocation7 + $0x170] sm:$0xff] }
  0x6f   :  { %2752 = vmatmul.mubr.msk.f32.gmra.mrb[4].mxu0 %vm153_vm2, %v420_v4  ;;  %253 = vmatprep.mubr.f32.mxu1 %v3894_v0  ;;  %v428_v48 = vsel %vm413_vm1, %v425_v38, %v427_v46  ;;  %v431_v50 = vsel %vm413_vm1, %v427_v46, %v414_v29  ;;  %v3204_v29 = vpack.c.bf16 %v783_v56, %v781_v53  ;;  %v593_v1 = vrot.slane %v4043_v42, 3  ;;  %v1120_v44 = vld [vmem:[#allocation7 + $0x1b8] sm:$0xff]  ;;  %v1117_v46 = vld [vmem:[#allocation7 + $0x1a0] sm:$0xff]  ;;  %v1123_v53 = vld [vmem:[#allocation7 + $0x1d0] sm:$0xff] }
  0x70   :  { %540 = vmatprep.mubr.f32.mxu0 %v3894_v0  ;;  %v590_v27 = vsel %vm587_vm4, %v588_v51, %v589_v52  ;;  %v3206_v60 = vpack.c.bf16 %v788_v58, %v786_v57  ;;  %v592_v63 = vsel %vm587_vm4, %v589_v52, %v591_v59  ;;  %v3208_v2 = vpack.c.bf16 %v787_v62, %v785_v61  ;;  %v1121_v52 = vld [vmem:[#allocation7 + $0x1c0] sm:$0xff]  ;;  %v1126_v57 = vld [vmem:[#allocation7 + $0x1e8] sm:$0xff]  ;;  %v1128_v58 = vld [vmem:[#allocation7 + $0x1f8] sm:$0xff] }
  0x71   :  { %3185 = vmatpush1.bf16.msra.mxu1 %v3184_v18  ;;  %v595_v3 = vrot.slane %v4053_v54, 3  ;;  %v597_v4 = vrot.slane %v4055_v55, 3  ;;  %v599_v5 = vrot.slane %v4076_v17, 3  ;;  %v601_v6 = vrot.slane %v4079_v20, 3  ;;  %v1032_v61 = vld [vmem:[#allocation7 + $0x8] sm:$0xff]  ;;  %v1034_v62 = vld [vmem:[#allocation7 + $0x18] sm:$0xff] }
  0x72   :  { %2737 = vmatmul.mubr.msk.f32.gmra.mrb[6].mxu1 %vm153_vm2, %v134_v12  ;;  %v3212_v12 = vpack.c.bf16 %v1099_v11, %v1097_v10  ;;  %v3220_v26 = vpack.c.bf16 %v1107_v23, %v1105_v22  ;;  %v3236_v56 = vpack.c.bf16 %v1123_v53, %v1121_v52 }
  0x73   :  { %2753 = vmatmul.mubr.msk.f32.gmra.mrb[6].mxu0 %vm153_vm2, %v422_v15  ;;  %259 = vmatprep.mubr.f32.mxu1 %v3894_v0  ;;  %v605_v7 = vsel %vm587_vm4, %v601_v6, %v588_v51  ;;  %v3214_v15 = vpack.c.bf16 %v1104_v14, %v1102_v13 }
  0x74   :  { %546 = vmatprep.mubr.f32.mxu0 %v3894_v0 }
  0x76   :  { %2738 = vmatmul.mubr.msk.f32.gmra.mrb[8].mxu1 %vm153_vm2, %v136_v16  ;;  %v1101_v16 = vld [vmem:[#allocation7 + $0x120] sm:$0xff] }
  0x77   :  { %2754 = vmatmul.mubr.msk.f32.gmra.mrb[8].mxu0 %vm153_vm2, %v424_v28  ;;  %265 = vmatprep.mubr.f32.mxu1 %v3894_v0  ;;  %v1110_v28 = vld [vmem:[#allocation7 + $0x168] sm:$0xff] }
  0x78   :  { %552 = vmatprep.mubr.f32.mxu0 %v3894_v0 }
  0x7a   :  { %2739 = vmatmul.mubr.msk.f32.gmra.mrb[10].mxu1 %vm153_vm2, %v138_v43  ;;  %v1118_v43 = vld [vmem:[#allocation7 + $0x1a8] sm:$0xff] }
  0x7b   :  { %2755 = vmatmul.mubr.msk.f32.gmra.mrb[10].mxu0 %vm153_vm2, %v426_v45  ;;  %271 = vmatprep.mubr.f32.mxu1 %v3894_v0  ;;  %v3230_v45 = vpack.c.bf16 %v1120_v44, %v1118_v43 }
  0x7c   :  { %558 = vmatprep.mubr.f32.mxu0 %v3894_v0 }
  0x7e   :  { %2740 = vmatmul.mubr.msk.f32.gmra.mrb[12].mxu1 %vm153_vm2, %v140_v47  ;;  %v1119_v47 = vld [vmem:[#allocation7 + $0x1b0] sm:$0xff] }
  0x7f   :  { %2756 = vmatmul.mubr.msk.f32.gmra.mrb[12].mxu0 %vm153_vm2, %v428_v48  ;;  %277 = vmatprep.mubr.f32.mxu1 %v3894_v0  ;;  %v3232_v48 = vpack.c.bf16 %v1119_v47, %v1117_v46 }
  0x80   :  { %564 = vmatprep.mubr.f32.mxu0 %v3894_v0 }
  0x82   :  { %2741 = vmatmul.mubr.msk.f32.gmra.mrb[14].mxu1 %vm153_vm2, %v143_v49  ;;  %v1122_v49 = vld [vmem:[#allocation7 + $0x1c8] sm:$0xff] }
  0x83   :  { %2757 = vmatmul.mubr.msk.f32.gmra.mrb[14].mxu0 %vm153_vm2, %v431_v50  ;;  %364 = vmatprep.mubr.f32.mxu1 %v3894_v0  ;;  %v1124_v50 = vld [vmem:[#allocation7 + $0x1d8] sm:$0xff] }
  0x84   :  { %696 = vmatprep.mubr.f32.mxu0 %v3894_v0  ;;  %v3234_v51 = vpack.c.bf16 %v1124_v50, %v1122_v49 }
  0x86   :  { %2742 = vmatmul.mubr.msk.f32.vlgmr.msra.gmra.mrb[0].mxu1 %vm153_vm2, %v4025_v24  ;;  %v594_v24 = vsel %vm587_vm4, %v591_v59, %v593_v1  ;;  %v1127_v59 = vld [vmem:[#allocation7 + $0x1f0] sm:$0xff] }
  0x87   :  { %2758 = vmatmul.mubr.msk.f32.vlgmr.msra.gmra.mrb[0].mxu0 %vm153_vm2, %v590_v27  ;;  %370 = vmatprep.mubr.f32.mxu1 %v3894_v0  ;;  %v3238_v27 = vpack.c.bf16 %v1128_v58, %v1126_v57 }
  0x88   :  { %3205 = vmatpush1.bf16.msra.mxu0 %v3204_v29  ;;  %702 = vmatprep.mubr.f32.mxu0 %v3894_v0  ;;  %v1125_v29 = vld [vmem:[#allocation7 + $0x1e0] sm:$0xff] }
  0x89   :  { %3207 = vmatprep.subr.bf16.mxu0 %v3206_v60  ;;  %v3240_v60 = vpack.c.bf16 %v1127_v59, %v1125_v29 }
  0x8a   :  { %2743 = vmatmul.mubr.msk.f32.gmra.mrb[2].mxu1 %vm153_vm2, %v4027_v25  ;;  %v596_v25 = vsel %vm587_vm4, %v593_v1, %v595_v3 }
  0x8b   :  { %2759 = vmatmul.mubr.msk.f32.gmra.mrb[2].mxu0 %vm153_vm2, %v592_v63  ;;  %376 = vmatprep.mubr.f32.mxu1 %v3894_v0  ;;  %v3242_v63 = vpack.c.bf16 %v1034_v62, %v1032_v61 }
  0x8c   :  { %708 = vmatprep.mubr.f32.mxu0 %v3894_v0  ;;  %3209 = vmatpush1.bf16.msra.mxu0 %v3208_v2 }
  0x8e   :  { %2744 = vmatmul.mubr.msk.f32.gmra.mrb[4].mxu1 %vm153_vm2, %v4033_v36  ;;  %v598_v36 = vsel %vm587_vm4, %v595_v3, %v597_v4 }
  0x8f   :  { %2760 = vmatmul.mubr.msk.f32.gmra.mrb[4].mxu0 %vm153_vm2, %v594_v24  ;;  %382 = vmatprep.mubr.f32.mxu1 %v3894_v0 }
  0x90   :  { %714 = vmatprep.mubr.f32.mxu0 %v3894_v0 }
  0x92   :  { %2745 = vmatmul.mubr.msk.f32.gmra.mrb[6].mxu1 %vm153_vm2, %v4043_v42  ;;  %v600_v42 = vsel %vm587_vm4, %v597_v4, %v599_v5 }
  0x93   :  { %2761 = vmatmul.mubr.msk.f32.gmra.mrb[6].mxu0 %vm153_vm2, %v596_v25  ;;  %388 = vmatprep.mubr.f32.mxu1 %v3894_v0 }
  0x94   :  { %720 = vmatprep.mubr.f32.mxu0 %v3894_v0 }
  0x96   :  { %2746 = vmatmul.mubr.msk.f32.gmra.mrb[8].mxu1 %vm153_vm2, %v4053_v54  ;;  %v602_v54 = vsel %vm587_vm4, %v599_v5, %v601_v6 }
  0x97   :  { %2762 = vmatmul.mubr.msk.f32.gmra.mrb[8].mxu0 %vm153_vm2, %v598_v36  ;;  %394 = vmatprep.mubr.f32.mxu1 %v3894_v0 }
  0x98   :  { %726 = vmatprep.mubr.f32.mxu0 %v3894_v0 }
  0x9a   :  { %2747 = vmatmul.mubr.msk.f32.gmra.mrb[10].mxu1 %vm153_vm2, %v4055_v55  ;;  %v1098_v55 = vld [vmem:[#allocation7 + $0x108] sm:$0xff] }
  0x9b   :  { %2763 = vmatmul.mubr.msk.f32.gmra.mrb[10].mxu0 %vm153_vm2, %v600_v42  ;;  %400 = vmatprep.mubr.f32.mxu1 %v3894_v0  ;;  %v3210_v9 = vpack.c.bf16 %v1100_v8, %v1098_v55 }
  0x9c   :  { %732 = vmatprep.mubr.f32.mxu0 %v3894_v0 }
  0x9d   :  { %3211 = vmatprep.subr.bf16.mxu1 %v3210_v9 }
  0x9e   :  { %2748 = vmatmul.mubr.msk.f32.gmra.mrb[12].mxu1 %vm153_vm2, %v4076_v17  ;;  %v1103_v17 = vld [vmem:[#allocation7 + $0x130] sm:$0xff] }
  0x9f   :  { %2764 = vmatmul.mubr.msk.f32.gmra.mrb[12].mxu0 %vm153_vm2, %v602_v54  ;;  %406 = vmatprep.mubr.f32.mxu1 %v3894_v0  ;;  %v3216_v18 = vpack.c.bf16 %v1103_v17, %v1101_v16 }
  0xa0   :  { %738 = vmatprep.mubr.f32.mxu0 %v3894_v0  ;;  %3213 = vmatpush1.bf16.msra.mxu1 %v3212_v12 }
  0xa1   :  { %3215 = vmatprep.subr.bf16.mxu1 %v3214_v15 }
  0xa2   :  { %2749 = vmatmul.mubr.msk.f32.gmra.mrb[14].mxu1 %vm153_vm2, %v4079_v20  ;;  %v1108_v20 = vld [vmem:[#allocation7 + $0x158] sm:$0xff] }
  0xa3   :  { %2765 = vmatmul.mubr.msk.f32.gmra.mrb[14].mxu0 %vm153_vm2, %v605_v7  ;;  %1193 = vmatprep.mubr.f32.mxu1 %v3894_v0 }
  0xa4   :  { %870 = vmatprep.mubr.f32.mxu0 %v3894_v0  ;;  %3217 = vmatpush1.bf16.msra.mxu1 %v3216_v18 }
  0xa7   :  { %2766 = vmatmul.mubr.msk.f32.vlgmr.msra.gmra.mrb[0].mxu0 %vm153_vm2, %v4082_v21  ;;  %v3218_v21 = vpack.c.bf16 %v1108_v20, %v1106_v19 }
  0xa8   :  { %876 = vmatprep.mubr.f32.mxu0 %v3894_v0 }
  0xa9   :  { %3219 = vmatprep.subr.bf16.mxu1 %v3218_v21 }
  0xaa   :  { %3221 = vmatpush1.bf16.msra.mxu1 %v3220_v26 }
  0xab   :  { %2767 = vmatmul.mubr.msk.f32.gmra.mrb[2].mxu0 %vm153_vm2, %v4090_v30  ;;  %v1112_v30 = vld [vmem:[#allocation7 + $0x178] sm:$0xff] }
  0xac   :  { %882 = vmatprep.mubr.f32.mxu0 %v3894_v0  ;;  %v3222_v31 = vpack.c.bf16 %v1112_v30, %v1110_v28 }
  0xae   :  { %3223 = vmatprep.subr.bf16.mxu1 %v3222_v31 }
  0xaf   :  { %2768 = vmatmul.mubr.msk.f32.gmra.mrb[4].mxu0 %vm153_vm2, %v4098_v34  ;;  %v3224_v34 = vpack.c.bf16 %v1111_v33, %v1109_v32  ;;  %v4237_v32 = vld [vmem:[%s4532_s2] ss:$0 sm:$0xff] }
  0xb0   :  { %888 = vmatprep.mubr.f32.mxu0 %v3894_v0 }
  0xb1   :  { %3225 = vmatpush1.bf16.msra.mxu1 %v3224_v34 }
  0xb3   :  { %2769 = vmatmul.mubr.msk.f32.gmra.mrb[6].mxu0 %vm153_vm2, %v4101_v35  ;;  %v1114_v35 = vld [vmem:[#allocation7 + $0x188] sm:$0xff] }
  0xb4   :  { %894 = vmatprep.mubr.f32.mxu0 %v3894_v0 }
  0xb7   :  { %2770 = vmatmul.mubr.msk.f32.gmra.mrb[8].mxu0 %vm153_vm2, %v4104_v37  ;;  %v1116_v37 = vld [vmem:[#allocation7 + $0x198] sm:$0xff] }
  0xb8   :  { %900 = vmatprep.mubr.f32.mxu0 %v3894_v0  ;;  %v3226_v38 = vpack.c.bf16 %v1116_v37, %v1114_v35 }
  0xba   :  { %3227 = vmatprep.subr.bf16.mxu1 %v3226_v38 }
  0xbb   :  { %2771 = vmatmul.mubr.msk.f32.gmra.mrb[10].mxu0 %vm153_vm2, %v4109_v39  ;;  %v1113_v39 = vld [vmem:[#allocation7 + $0x180] sm:$0xff] }
  0xbc   :  { %906 = vmatprep.mubr.f32.mxu0 %v3894_v0 }
  0xbf   :  { %2772 = vmatmul.mubr.msk.f32.gmra.mrb[12].mxu0 %vm153_vm2, %v4112_v40  ;;  %v1115_v40 = vld [vmem:[#allocation7 + $0x190] sm:$0xff] }
  0xc0   :  { %912 = vmatprep.mubr.f32.mxu0 %v3894_v0 }
  0xc3   :  { %2773 = vmatmul.mubr.msk.f32.gmra.mrb[14].mxu0 %vm153_vm2, %v4115_v41  ;;  %v3228_v41 = vpack.c.bf16 %v1115_v40, %v1113_v39 }
  0xc5   :  { %3229 = vmatpush1.bf16.msra.mxu1 %v3228_v41 }
  0xc6   :  { %3231 = vmatprep.subr.bf16.mxu1 %v3230_v45 }
  0xc9   :  { %3233 = vmatpush1.bf16.msra.mxu1 %v3232_v48 }
  0xca   :  { %3235 = vmatprep.subr.bf16.mxu1 %v3234_v51 }
  0xcd   :  { %3237 = vmatpush1.bf16.msra.mxu1 %v3236_v56 }
  0xce   :  { %3239 = vmatprep.subr.bf16.mxu1 %v3238_v27 }
  0xd1   :  { %3241 = vmatpush1.bf16.msra.mxu1 %v3240_v60 }
  0xd2   :  { %3243 = vmatprep.subr.bf16.mxu1 %v3242_v63 }
 0x159   :  { %v366_v1 = vpop.f32.mrb[0].mxu1 }
 0x15a   :  { %v368_v2 = vpop.f32.mrb[1].mxu1 }
 0x15d   :  { %v372_v24 = vpop.f32.mrb[2].mxu1 }
 0x15e   :  { %v374_v3 = vpop.f32.mrb[3].mxu1 }
 0x161   :  { %v378_v25 = vpop.f32.mrb[4].mxu1 }
 0x162   :  { %v380_v4 = vpop.f32.mrb[5].mxu1 }
 0x165   :  { %v384_v36 = vpop.f32.mrb[6].mxu1 }
 0x166   :  { %v386_v5 = vpop.f32.mrb[7].mxu1 }
 0x169   :  { %v390_v42 = vpop.f32.mrb[8].mxu1 }
 0x16a   :  { %v392_v6 = vpop.f32.mrb[9].mxu1 }
 0x16d   :  { %v396_v54 = vpop.f32.mrb[10].mxu1 }
 0x16e   :  { %v398_v7 = vpop.f32.mrb[11].mxu1 }
 0x171   :  { %v402_v55 = vpop.f32.mrb[12].mxu1 }
 0x172   :  { %v404_v8 = vpop.f32.mrb[13].mxu1 }
 0x175   :  { %v4224_v9 = vpop.f32.mrb[14].mxu1 }
 0x176   :  { %v4226_v10 = vpop.f32.mrb[15].mxu1 }
 0x17a   :  { %v872_v11 = vpop.f32.mrb[0].mxu0 }
 0x17b   :  { %v3554_v12 = vadd.f32 %v872_v11, %v366_v1  ;;  %v874_v13 = vpop.f32.mrb[1].mxu0 }
 0x17c   :  { %v3555_v14 = vadd.f32 %v874_v13, %v368_v2 }
 0x17e   :  { %v4228_v15 = vmax.f32 %v3554_v12, %v3555_v14  ;;  %v878_v16 = vpop.f32.mrb[2].mxu0 }
 0x17f   :  { %v3556_v17 = vadd.f32 %v878_v16, %v372_v24  ;;  %v880_v18 = vpop.f32.mrb[3].mxu0 }
 0x180   :  { %v3557_v19 = vadd.f32 %v880_v18, %v374_v3  ;;  %v951_v26 = vrot.slane %v4228_v15, 1 }
 0x182   :  { %v936_v20 = vmax.f32 %v3556_v17, %v3557_v19  ;;  %v884_v21 = vpop.f32.mrb[4].mxu0 }
 0x183   :  { %v3558_v22 = vadd.f32 %v884_v21, %v378_v25  ;;  %v886_v23 = vpop.f32.mrb[5].mxu0 }
 0x184   :  { %v952_v28 = vrot.slane %v936_v20, 1  ;;  %v3559_v30 = vadd.f32 %v886_v23, %v380_v4 }
 0x186   :  { %v953_v31 = vsel %vm125_vm0, %v951_v26, %v952_v28  ;;  %v937_v33 = vmax.f32 %v3558_v22, %v3559_v30  ;;  %v890_v34 = vpop.f32.mrb[6].mxu0 }
 0x187   :  { %v976_v35 = vmax.f32 %v4228_v15, %v953_v31  ;;  %v3560_v37 = vadd.f32 %v890_v34, %v384_v36  ;;  %v892_v38 = vpop.f32.mrb[7].mxu0  ;;  %v1033_v34 = vld [vmem:[#allocation7 + $0x10] sm:$0xff] }
 0x188   :  { %v954_v39 = vrot.slane %v937_v33, 1  ;;  %v3561_v40 = vadd.f32 %v892_v38, %v386_v5  ;;  %v1036_v38 = vld [vmem:[#allocation7 + $0x28] sm:$0xff] }
 0x189   :  { %v991_v41 = vadd.f32 %v4237_v32, %v976_v35 }
 0x18a   :  { %v955_v43 = vsel %vm125_vm0, %v952_v28, %v954_v39  ;;  %v938_v44 = vmax.f32 %v3560_v37, %v3561_v40  ;;  %v896_v45 = vpop.f32.mrb[8].mxu0 }
 0x18b   :  { %v999_v46 = vmul.f32 0.5, %v991_v41  ;;  %v977_v47 = vmax.f32 %v936_v20, %v955_v43  ;;  %v3562_v48 = vadd.f32 %v896_v45, %v390_v42  ;;  %v898_v49 = vpop.f32.mrb[9].mxu0 }
 0x18c   :  { %v956_v50 = vrot.slane %v938_v44, 1  ;;  %v3563_v51 = vadd.f32 %v898_v49, %v392_v6 }
 0x18d   :  { %3711 = vtanh.f32 %v999_v46  ;;  %v992_v52 = vadd.f32 %v4237_v32, %v977_v47 }
 0x18e   :  { %v957_v53 = vsel %vm125_vm0, %v954_v39, %v956_v50  ;;  %v939_v56 = vmax.f32 %v3562_v48, %v3563_v51  ;;  %v902_v57 = vpop.f32.mrb[10].mxu0  ;;  %v1038_v39 = vld [vmem:[#allocation7 + $0x38] sm:$0xff]  ;;  %v1035_v51 = vld [vmem:[#allocation7 + $0x20] sm:$0xff] }
 0x18f   :  { %v1000_v58 = vmul.f32 0.5, %v992_v52  ;;  %v978_v27 = vmax.f32 %v937_v33, %v957_v53  ;;  %v3564_v29 = vadd.f32 %v902_v57, %v396_v54  ;;  %v904_v59 = vpop.f32.mrb[11].mxu0  ;;  %v1031_v33 = vld [vmem:[#allocation7] sm:$0xff]  ;;  %v3246_v15 = vpack.c.bf16 %v1038_v39, %v1036_v38  ;;  %v1042_v57 = vld [vmem:[#allocation7 + $0x58] sm:$0xff]  ;;  %v1053_v39 = vld [vmem:[#allocation7 + $0xb0] sm:$0xff] }
 0x190   :  { %v958_v60 = vrot.slane %v939_v56, 1  ;;  %v3565_v61 = vadd.f32 %v904_v59, %v398_v7  ;;  %v3244_v48 = vpack.c.bf16 %v1033_v34, %v1031_v33  ;;  %v1051_v38 = vld [vmem:[#allocation7 + $0xa0] sm:$0xff] }
 0x191   :  { %3713 = vtanh.f32 %v1000_v58  ;;  %v993_v62 = vadd.f32 %v4237_v32, %v978_v27 }
 0x192   :  { %v959_v63 = vsel %vm125_vm0, %v956_v50, %v958_v60  ;;  %v940_v1 = vmax.f32 %v3564_v29, %v3565_v61  ;;  %v908_v2 = vpop.f32.mrb[12].mxu0 }
 0x193   :  { %v1001_v24 = vmul.f32 0.5, %v993_v62  ;;  %v979_v3 = vmax.f32 %v938_v44, %v959_v63  ;;  %v3566_v25 = vadd.f32 %v908_v2, %v402_v55  ;;  %v910_v4 = vpop.f32.mrb[13].mxu0  ;;  %v1039_v62 = vld [vmem:[#allocation7 + $0x40] sm:$0xff]  ;;  %v1041_v63 = vld [vmem:[#allocation7 + $0x50] sm:$0xff] }
 0x194   :  { %v960_v36 = vrot.slane %v940_v1, 1  ;;  %v3567_v5 = vadd.f32 %v910_v4, %v404_v8 }
 0x195   :  { %3715 = vtanh.f32 %v1001_v24  ;;  %v994_v42 = vadd.f32 %v4237_v32, %v979_v3  ;;  %v1044_v24 = vld [vmem:[#allocation7 + $0x68] sm:$0xff]  ;;  %v1046_v3 = vld [vmem:[#allocation7 + $0x78] sm:$0xff] }
 0x196   :  { %v961_v6 = vsel %vm125_vm0, %v958_v60, %v960_v36  ;;  %v941_v54 = vmax.f32 %v3566_v25, %v3567_v5  ;;  %v914_v7 = vpop.f32.mrb[14].mxu0  ;;  %v3252_v5 = vpack.c.bf16 %v1041_v63, %v1039_v62  ;;  %v1381_v63 = vld [vmem:[#allocation7 + $0x200] sm:$0xff] }
 0x197   :  { %v3712_v11 = vpop.eup %3711  ;;  %v1002_v12 = vmul.f32 0.5, %v994_v42  ;;  %v980_v13 = vmax.f32 %v939_v56, %v961_v6  ;;  %v3568_v14 = vadd.f32 %v914_v7, %v4224_v9  ;;  %v916_v16 = vpop.f32.mrb[15].mxu0  ;;  %v1040_v56 = vld [vmem:[#allocation7 + $0x48] sm:$0xff]  ;;  %v3254_v42 = vpack.c.bf16 %v1046_v3, %v1044_v24  ;;  %v1043_v6 = vld [vmem:[#allocation7 + $0x60] sm:$0xff] }
 0x198   :  { %v1015_v17 = vmul.f32 0.5, %v3712_v11  ;;  %v962_v18 = vrot.slane %v941_v54, 1  ;;  %v3569_v55 = vadd.f32 %v916_v16, %v4226_v10  ;;  %v3250_v61 = vpack.c.bf16 %v1042_v57, %v1040_v56  ;;  %v1062_v56 = vld [vmem:[#allocation7 + $0xf8] sm:$0xff]  ;;  %v1386_v3 = vld [vmem:[#allocation7 + $0x228] sm:$0xff] }
 0x199   :  { %3717 = vtanh.f32 %v1002_v12  ;;  %v995_v8 = vadd.f32 %v4237_v32, %v980_v13  ;;  %v1048_v12 = vld [vmem:[#allocation7 + $0x88] sm:$0xff]  ;;  %v1050_v13 = vld [vmem:[#allocation7 + $0x98] sm:$0xff] }
 0x19a   :  { %v963_v19 = vsel %vm125_vm0, %v960_v36, %v962_v18  ;;  %v942_v20 = vmax.f32 %v3568_v14, %v3569_v55  ;;  %v4252_v28 = vadd.f32 0.5, %v1015_v17  ;;  %v3258_v55 = vpack.c.bf16 %v1050_v13, %v1048_v12  ;;  %v1389_v12 = vld [vmem:[#allocation7 + $0x240] sm:$0xff]  ;;  %v1391_v13 = vld [vmem:[#allocation7 + $0x250] sm:$0xff] }
 0x19b   :  { %v3714_v21 = vpop.eup %3713  ;;  %v1003_v22 = vmul.f32 0.5, %v995_v8  ;;  %v981_v23 = vmax.f32 %v940_v1, %v963_v19  ;;  %v1047_v8 = vld [vmem:[#allocation7 + $0x80] sm:$0xff]  ;;  %v1049_v19 = vld [vmem:[#allocation7 + $0x90] sm:$0xff] }
 0x19c   :  { %v1016_v30 = vmul.f32 0.5, %v3714_v21  ;;  %v964_v31 = vrot.slane %v942_v20, 1  ;;  %v1071_v46 = vrot.slane %v4252_v28, 2  ;;  %v3260_v34 = vpack.c.bf16 %v1049_v19, %v1047_v8  ;;  %v1395_v8 = vld [vmem:[#allocation7 + $0x270] sm:$0xff]  ;;  %v1398_v19 = vld [vmem:[#allocation7 + $0x288] sm:$0xff] }
 0x19d   :  { %3719 = vtanh.f32 %v1003_v22  ;;  %v996_v9 = vadd.f32 %v4237_v32, %v981_v23  ;;  %v1052_v22 = vld [vmem:[#allocation7 + $0xa8] sm:$0xff]  ;;  %v1054_v23 = vld [vmem:[#allocation7 + $0xb8] sm:$0xff] }
 0x19e   :  { %v4255_v35 = vadd.f32 0.5, %v1016_v30  ;;  %v965_v10 = vsel %vm125_vm0, %v962_v18, %v964_v31  ;;  %v975_v37 = vsel %vm125_vm0, %v964_v31, %v951_v26  ;;  %v1037_v26 = vld [vmem:[#allocation7 + $0x30] sm:$0xff] }
 0x19f   :  { %v3716_v40 = vpop.eup %3715  ;;  %v1004_v41 = vmul.f32 0.5, %v996_v9  ;;  %v982_v43 = vmax.f32 %v941_v54, %v965_v10  ;;  %v983_v44 = vmax.f32 %v942_v20, %v975_v37  ;;  %v3248_v60 = vpack.c.bf16 %v1037_v26, %v1035_v51  ;;  %v1045_v54 = vld [vmem:[#allocation7 + $0x70] sm:$0xff] }
 0x1a0   :  { %v1017_v45 = vmul.f32 0.5, %v3716_v40  ;;  %v1072_v47 = vrot.slane %v4255_v35, 2  ;;  %v3256_v18 = vpack.c.bf16 %v1045_v54, %v1043_v6  ;;  %v3262_v37 = vpack.c.bf16 %v1054_v23, %v1052_v22  ;;  %v1390_v6 = vld [vmem:[#allocation7 + $0x248] sm:$0xff]  ;;  %v1392_v54 = vld [vmem:[#allocation7 + $0x258] sm:$0xff] }
 0x1a1   :  { %3721 = vtanh.f32 %v1004_v41  ;;  %v997_v49 = vadd.f32 %v4237_v32, %v982_v43  ;;  %v998_v50 = vadd.f32 %v4237_v32, %v983_v44  ;;  %v1056_v43 = vld [vmem:[#allocation7 + $0xc8] sm:$0xff]  ;;  %v1058_v44 = vld [vmem:[#allocation7 + $0xd8] sm:$0xff] }
 0x1a2   :  { %v4265_v52 = vadd.f32 0.5, %v1017_v45  ;;  %v1073_v53 = vsel %vm413_vm1, %v1071_v46, %v1072_v47 }
 0x1a3   :  { %v3718_v58 = vpop.eup %3717  ;;  %v1005_v27 = vmul.f32 0.5, %v997_v49  ;;  %v1006_v29 = vmul.f32 0.5, %v998_v50  ;;  %1194 = vmatmul.mubr.f32.vlgmr.msra.gmra.mrb[16].mxu1 %v1073_v53  ;;  %v3266_v49 = vpack.c.bf16 %v1058_v44, %v1056_v43  ;;  %v1055_v50 = vld [vmem:[#allocation7 + $0xc0] sm:$0xff]  ;;  %v1060_v53 = vld [vmem:[#allocation7 + $0xe8] sm:$0xff] }
 0x1a4   :  { %v1018_v59 = vmul.f32 0.5, %v3718_v58  ;;  %3245 = vmatpush1.bf16.msra.mxu1 %v3244_v48  ;;  %1199 = vmatprep.mubr.f32.mxu1 %v3894_v0  ;;  %v1074_v32 = vrot.slane %v4265_v52, 2  ;;  %v3264_v48 = vpack.c.bf16 %v1053_v39, %v1051_v38  ;;  %v3270_v58 = vpack.c.bf16 %v1062_v56, %v1060_v53  ;;  %v1403_v38 = vld [vmem:[#allocation7 + $0x2b0] sm:$0xff]  ;;  %v1406_v39 = vld [vmem:[#allocation7 + $0x2c8] sm:$0xff] }
 0x1a5   :  { %3723 = vtanh.f32 %v1005_v27  ;;  %3247 = vmatprep.subr.bf16.mxu1 %v3246_v15  ;;  %v1057_v15 = vld [vmem:[#allocation7 + $0xd0] sm:$0xff]  ;;  %v1059_v27 = vld [vmem:[#allocation7 + $0xe0] sm:$0xff]  ;;  %v1570_v56 = vld [vmem:[#allocation7 + $0x308] sm:$0xff] }
 0x1a6   :  { %v4272_v1 = vadd.f32 0.5, %v1018_v59  ;;  %3725 = vtanh.f32 %v1006_v29  ;;  %v1075_v2 = vsel %vm413_vm1, %v1072_v47, %v1074_v32  ;;  %v3268_v57 = vpack.c.bf16 %v1057_v15, %v1055_v50  ;;  %v1061_v29 = vld [vmem:[#allocation7 + $0xf0] sm:$0xff]  ;;  %v1412_v50 = vld [vmem:[#allocation7 + $0x2f8] sm:$0xff] }
 0x1a7   :  { %v3720_v25 = vpop.eup %3719  ;;  %1200 = vmatmul.mubr.f32.gmra.mrb[18].mxu1 %v1075_v2  ;;  %v1383_v2 = vld [vmem:[#allocation7 + $0x210] sm:$0xff] }
 0x1a8   :  { %v1019_v4 = vmul.f32 0.5, %v3720_v25  ;;  %3249 = vmatpush1.bf16.msra.mxu1 %v3248_v60  ;;  %1205 = vmatprep.mubr.f32.mxu1 %v3894_v0  ;;  %v1076_v36 = vrot.slane %v4272_v1, 2  ;;  %v1384_v60 = vld [vmem:[#allocation7 + $0x218] sm:$0xff]  ;;  %v1411_v53 = vld [vmem:[#allocation7 + $0x2f0] sm:$0xff] }
 0x1a9   :  { %3251 = vmatprep.subr.bf16.mxu1 %v3250_v61  ;;  %v3272_v61 = vpack.c.bf16 %v1061_v29, %v1059_v27  ;;  %v1388_v25 = vld [vmem:[#allocation7 + $0x238] sm:$0xff]  ;;  %v1569_v29 = vld [vmem:[#allocation7 + $0x300] sm:$0xff] }
 0x1aa   :  { %v4277_v7 = vadd.f32 0.5, %v1019_v4  ;;  %v1077_v11 = vsel %vm413_vm1, %v1074_v32, %v1076_v36  ;;  %v1382_v32 = vld [vmem:[#allocation7 + $0x208] sm:$0xff]  ;;  %v3276_v4 = vpack.c.bf16 %v1383_v2, %v1381_v63 }
 0x1ab   :  { %v3722_v14 = vpop.eup %3721  ;;  %1206 = vmatmul.mubr.f32.gmra.mrb[20].mxu1 %v1077_v11  ;;  %v3274_v62 = vpack.c.bf16 %v1384_v60, %v1382_v32  ;;  %v1356_v32 = vrot.slane %v4255_v35, 4  ;;  %v1574_v60 = vld [vmem:[#allocation7 + $0x328] sm:$0xff] }
 0x1ac   :  { %v1020_v16 = vmul.f32 0.5, %v3722_v14  ;;  %3253 = vmatpush1.bf16.msra.mxu1 %v3252_v5  ;;  %1211 = vmatprep.mubr.f32.mxu1 %v3894_v0  ;;  %v1078_v17 = vrot.slane %v4277_v7, 2  ;;  %v1385_v5 = vld [vmem:[#allocation7 + $0x220] sm:$0xff]  ;;  %v1394_v14 = vld [vmem:[#allocation7 + $0x268] sm:$0xff] }
 0x1ad   :  { %3255 = vmatprep.subr.bf16.mxu1 %v3254_v42  ;;  %v1387_v42 = vld [vmem:[#allocation7 + $0x230] sm:$0xff] }
 0x1ae   :  { %v4282_v20 = vadd.f32 0.5, %v1020_v16  ;;  %v1079_v21 = vsel %vm413_vm1, %v1076_v36, %v1078_v17  ;;  %v3278_v36 = vpack.c.bf16 %v1388_v25, %v1386_v3  ;;  %v3280_v11 = vpack.c.bf16 %v1387_v42, %v1385_v5  ;;  %v1396_v16 = vld [vmem:[#allocation7 + $0x278] sm:$0xff]  ;;  %v1575_v3 = vld [vmem:[#allocation7 + $0x330] sm:$0xff] }
 0x1af   :  { %v3724_v30 = vpop.eup %3723  ;;  %1212 = vmatmul.mubr.f32.gmra.mrb[22].mxu1 %v1079_v21  ;;  %v1400_v21 = vld [vmem:[#allocation7 + $0x298] sm:$0xff] }
 0x1b0   :  { %v3726_v31 = vpop.eup %3725  ;;  %v1021_v9 = vmul.f32 0.5, %v3724_v30  ;;  %3257 = vmatpush1.bf16.msra.mxu1 %v3256_v18  ;;  %1217 = vmatprep.mubr.f32.mxu1 %v3894_v0  ;;  %v1080_v33 = vrot.slane %v4282_v20, 2  ;;  %v3286_v18 = vpack.c.bf16 %v1396_v16, %v1394_v14  ;;  %v3290_v23 = vpack.c.bf16 %v1400_v21, %v1398_v19  ;;  %v1397_v30 = vld [vmem:[#allocation7 + $0x280] sm:$0xff]  ;;  %v1580_v5 = vld [vmem:[#allocation7 + $0x358] sm:$0xff]  ;;  %v1586_v21 = vld [vmem:[#allocation7 + $0x388] sm:$0xff] }
 0x1b1   :  { %v1022_v10 = vmul.f32 0.5, %v3726_v31  ;;  %3259 = vmatprep.subr.bf16.mxu1 %v3258_v55  ;;  %v1393_v55 = vld [vmem:[#allocation7 + $0x260] sm:$0xff]  ;;  %v1399_v31 = vld [vmem:[#allocation7 + $0x290] sm:$0xff]  ;;  %v1584_v14 = vld [vmem:[#allocation7 + $0x378] sm:$0xff]  ;;  %v1362_v19 = vrot.slane %v4277_v7, 4 }
 0x1b2   :  { %v4287_v40 = vadd.f32 0.5, %v1021_v9  ;;  %v1081_v41 = vsel %vm413_vm1, %v1078_v17, %v1080_v33  ;;  %v3284_v17 = vpack.c.bf16 %v1391_v13, %v1389_v12  ;;  %v3288_v22 = vpack.c.bf16 %v1395_v8, %v1393_v55  ;;  %v1402_v9 = vld [vmem:[#allocation7 + $0x2a8] sm:$0xff]  ;;  %v1583_v55 = vld [vmem:[#allocation7 + $0x370] sm:$0xff] }
 0x1b3   :  { %v4290_v45 = vadd.f32 0.5, %v1022_v10  ;;  %1218 = vmatmul.mubr.f32.gmra.mrb[24].mxu1 %v1081_v41  ;;  %v1408_v41 = vld [vmem:[#allocation7 + $0x2d8] sm:$0xff]  ;;  %v1360_v12 = vrot.slane %v4272_v1, 4  ;;  %v1582_v13 = vld [vmem:[#allocation7 + $0x368] sm:$0xff] }
 0x1b4   :  { %3261 = vmatpush1.bf16.msra.mxu1 %v3260_v34  ;;  %1223 = vmatprep.mubr.f32.mxu1 %v3894_v0  ;;  %v1082_v47 = vrot.slane %v4287_v40, 2  ;;  %v3292_v34 = vpack.c.bf16 %v1399_v31, %v1397_v30  ;;  %v3298_v44 = vpack.c.bf16 %v1408_v41, %v1406_v39  ;;  %v1585_v31 = vld [vmem:[#allocation7 + $0x380] sm:$0xff] }
 0x1b5   :  { %3263 = vmatprep.subr.bf16.mxu1 %v3262_v37  ;;  %v1084_v26 = vrot.slane %v4290_v45, 2  ;;  %v1401_v37 = vld [vmem:[#allocation7 + $0x2a0] sm:$0xff] }
 0x1b6   :  { %v1083_v51 = vsel %vm413_vm1, %v1080_v33, %v1082_v47  ;;  %v1404_v33 = vld [vmem:[#allocation7 + $0x2b8] sm:$0xff]  ;;  %v3296_v43 = vpack.c.bf16 %v1403_v38, %v1401_v37  ;;  %v1589_v41 = vld [vmem:[#allocation7 + $0x3a0] sm:$0xff] }
 0x1b7   :  { %1224 = vmatmul.mubr.f32.gmra.mrb[26].mxu1 %v1083_v51  ;;  %v1085_v59 = vsel %vm413_vm1, %v1082_v47, %v1084_v26  ;;  %v1095_v24 = vsel %vm413_vm1, %v1084_v26, %v1071_v46  ;;  %v3282_v46 = vpack.c.bf16 %v1392_v54, %v1390_v6  ;;  %v3294_v10 = vpack.c.bf16 %v1404_v33, %v1402_v9  ;;  %v1405_v47 = vld [vmem:[#allocation7 + $0x2c0] sm:$0xff]  ;;  %v1587_v9 = vld [vmem:[#allocation7 + $0x390] sm:$0xff]  ;;  %v1592_v37 = vld [vmem:[#allocation7 + $0x3b8] sm:$0xff] }
 0x1b8   :  { %3265 = vmatpush1.bf16.msra.mxu1 %v3264_v48  ;;  %1229 = vmatprep.mubr.f32.mxu1 %v3894_v0  ;;  %v1407_v48 = vld [vmem:[#allocation7 + $0x2d0] sm:$0xff]  ;;  %v1409_v26 = vld [vmem:[#allocation7 + $0x2e0] sm:$0xff]  ;;  %v1363_v33 = vsel %vm761_vm3, %v1360_v12, %v1362_v19  ;;  %v3324_v38 = vpack.c.bf16 %v1587_v9, %v1585_v31 }
 0x1b9   :  { %3267 = vmatprep.subr.bf16.mxu1 %v3266_v49  ;;  %v1410_v49 = vld [vmem:[#allocation7 + $0x2e8] sm:$0xff]  ;;  %v3300_v15 = vpack.c.bf16 %v1407_v48, %v1405_v47  ;;  %v1577_v54 = vld [vmem:[#allocation7 + $0x340] sm:$0xff]  ;;  %v1366_v47 = vrot.slane %v4287_v40, 4 }
 0x1ba   :  { %v3302_v51 = vpack.c.bf16 %v1412_v50, %v1410_v49  ;;  %v1594_v48 = vld [vmem:[#allocation7 + $0x3c8] sm:$0xff]  ;;  %v1596_v49 = vld [vmem:[#allocation7 + $0x3d8] sm:$0xff]  ;;  %v1743_v9 = vld [vmem:[#allocation7 + $0x460] sm:$0xff] }
 0x1bb   :  { %1230 = vmatmul.mubr.f32.gmra.mrb[28].mxu1 %v1085_v59  ;;  %v1571_v59 = vld [vmem:[#allocation7 + $0x310] sm:$0xff] }
 0x1bc   :  { %3269 = vmatpush1.bf16.msra.mxu1 %v3268_v57  ;;  %1235 = vmatprep.mubr.f32.mxu1 %v3894_v0  ;;  %v1572_v57 = vld [vmem:[#allocation7 + $0x318] sm:$0xff]  ;;  %v3308_v63 = vpack.c.bf16 %v1571_v59, %v1569_v29  ;;  %v1597_v59 = vld [vmem:[#allocation7 + $0x3e0] sm:$0xff] }
 0x1bd   :  { %3271 = vmatprep.subr.bf16.mxu1 %v3270_v58  ;;  %v3304_v58 = vpack.c.bf16 %v1411_v53, %v1409_v26  ;;  %v3306_v27 = vpack.c.bf16 %v1572_v57, %v1570_v56  ;;  %v1595_v26 = vld [vmem:[#allocation7 + $0x3d0] sm:$0xff]  ;;  %v1368_v56 = vrot.slane %v4290_v45, 4  ;;  %v1598_v57 = vld [vmem:[#allocation7 + $0x3e8] sm:$0xff] }
 0x1bf   :  { %1236 = vmatmul.mubr.f32.gmra.mrb[30].mxu1 %v1095_v24  ;;  %v1573_v24 = vld [vmem:[#allocation7 + $0x320] sm:$0xff] }
 0x1c0   :  { %3273 = vmatpush1.bf16.msra.mxu1 %v3272_v61  ;;  %1306 = vmatprep.mubr.f32.mxu1 %v3894_v0  ;;  %v1576_v61 = vld [vmem:[#allocation7 + $0x338] sm:$0xff]  ;;  %v3312_v42 = vpack.c.bf16 %v1575_v3, %v1573_v24  ;;  %v1731_v3 = vld [vmem:[#allocation7 + $0x400] sm:$0xff] }
 0x1c1   :  { %3275 = vmatprep.subr.bf16.mxu1 %v3274_v62  ;;  %v1355_v62 = vrot.slane %v4252_v28, 4  ;;  %v3310_v2 = vpack.c.bf16 %v1576_v61, %v1574_v60  ;;  %v1369_v60 = vsel %vm761_vm3, %v1366_v47, %v1368_v56  ;;  %v1732_v61 = vld [vmem:[#allocation7 + $0x408] sm:$0xff] }
 0x1c3   :  { %1307 = vmatmul.mubr.f32.vlgmr.msra.gmra.mrb[16].mxu1 %v4252_v28  ;;  %v1357_v25 = vsel %vm761_vm3, %v1355_v62, %v1356_v32 }
 0x1c4   :  { %3277 = vmatpush1.bf16.msra.mxu1 %v3276_v4  ;;  %1312 = vmatprep.mubr.f32.mxu1 %v3894_v0  ;;  %v1358_v4 = vrot.slane %v4265_v52, 4 }
 0x1c5   :  { %3279 = vmatprep.subr.bf16.mxu1 %v3278_v36  ;;  %v1578_v36 = vld [vmem:[#allocation7 + $0x348] sm:$0xff] }
 0x1c6   :  { %v3314_v6 = vpack.c.bf16 %v1580_v5, %v1578_v36  ;;  %v1361_v8 = vsel %vm761_vm3, %v1358_v4, %v1360_v12  ;;  %v1544_v36 = vrot.slane %v4255_v35, 6  ;;  %v1736_v5 = vld [vmem:[#allocation7 + $0x428] sm:$0xff]  ;;  %v1737_v12 = vld [vmem:[#allocation7 + $0x430] sm:$0xff] }
 0x1c7   :  { %1313 = vmatmul.mubr.f32.gmra.mrb[18].mxu1 %v4255_v35 }
 0x1c8   :  { %3281 = vmatpush1.bf16.msra.mxu1 %v3280_v11  ;;  %1318 = vmatprep.mubr.f32.mxu1 %v3894_v0  ;;  %v1579_v11 = vld [vmem:[#allocation7 + $0x350] sm:$0xff] }
 0x1c9   :  { %3283 = vmatprep.subr.bf16.mxu1 %v3282_v46  ;;  %v1359_v46 = vsel %vm761_vm3, %v1356_v32, %v1358_v4  ;;  %v3316_v16 = vpack.c.bf16 %v1579_v11, %v1577_v54  ;;  %v1599_v32 = vld [vmem:[#allocation7 + $0x3f0] sm:$0xff]  ;;  %v1379_v4 = vsel %vm761_vm3, %v1368_v56, %v1355_v62 }
 0x1cb   :  { %1319 = vmatmul.mubr.f32.gmra.mrb[20].mxu1 %v4265_v52 }
 0x1cc   :  { %3285 = vmatpush1.bf16.msra.mxu1 %v3284_v17  ;;  %1324 = vmatprep.mubr.f32.mxu1 %v3894_v0  ;;  %v3318_v17 = vpack.c.bf16 %v1584_v14, %v1582_v13  ;;  %v1546_v13 = vrot.slane %v4265_v52, 6  ;;  %v1740_v14 = vld [vmem:[#allocation7 + $0x448] sm:$0xff] }
 0x1cd   :  { %3287 = vmatprep.subr.bf16.mxu1 %v3286_v18  ;;  %v1581_v18 = vld [vmem:[#allocation7 + $0x360] sm:$0xff] }
 0x1cf   :  { %1325 = vmatmul.mubr.f32.gmra.mrb[22].mxu1 %v4272_v1 }
 0x1d0   :  { %3289 = vmatpush1.bf16.msra.mxu1 %v3288_v22  ;;  %1330 = vmatprep.mubr.f32.mxu1 %v3894_v0  ;;  %v1588_v22 = vld [vmem:[#allocation7 + $0x398] sm:$0xff] }
 0x1d1   :  { %3291 = vmatprep.subr.bf16.mxu1 %v3290_v23  ;;  %v3320_v23 = vpack.c.bf16 %v1583_v55, %v1581_v18  ;;  %v3322_v30 = vpack.c.bf16 %v1588_v22, %v1586_v21  ;;  %v1739_v55 = vld [vmem:[#allocation7 + $0x440] sm:$0xff]  ;;  %v1548_v21 = vrot.slane %v4272_v1, 6  ;;  %v1744_v22 = vld [vmem:[#allocation7 + $0x468] sm:$0xff] }
 0x1d3   :  { %1331 = vmatmul.mubr.f32.gmra.mrb[24].mxu1 %v4277_v7 }
 0x1d4   :  { %3293 = vmatpush1.bf16.msra.mxu1 %v3292_v34  ;;  %1336 = vmatprep.mubr.f32.mxu1 %v3894_v0  ;;  %v1364_v34 = vrot.slane %v4282_v20, 4 }
 0x1d5   :  { %3295 = vmatprep.subr.bf16.mxu1 %v3294_v10  ;;  %v1590_v10 = vld [vmem:[#allocation7 + $0x3a8] sm:$0xff] }
 0x1d6   :  { %v3326_v39 = vpack.c.bf16 %v1592_v37, %v1590_v10  ;;  %v1367_v53 = vsel %vm761_vm3, %v1364_v34, %v1366_v47  ;;  %v1550_v10 = vrot.slane %v4277_v7, 6  ;;  %v1748_v37 = vld [vmem:[#allocation7 + $0x488] sm:$0xff] }
 0x1d7   :  { %1337 = vmatmul.mubr.f32.gmra.mrb[26].mxu1 %v4282_v20 }
 0x1d8   :  { %3297 = vmatpush1.bf16.msra.mxu1 %v3296_v43  ;;  %1342 = vmatprep.mubr.f32.mxu1 %v3894_v0  ;;  %v1591_v43 = vld [vmem:[#allocation7 + $0x3b0] sm:$0xff]  ;;  %v1551_v47 = vsel %vm1542_vm5, %v1548_v21, %v1550_v10 }
 0x1d9   :  { %3299 = vmatprep.subr.bf16.mxu1 %v3298_v44  ;;  %v1365_v44 = vsel %vm761_vm3, %v1362_v19, %v1364_v34  ;;  %v3328_v50 = vpack.c.bf16 %v1591_v43, %v1589_v41  ;;  %v1547_v19 = vsel %vm1542_vm5, %v1544_v36, %v1546_v13  ;;  %v1549_v34 = vsel %vm1542_vm5, %v1546_v13, %v1548_v21  ;;  %v1747_v43 = vld [vmem:[#allocation7 + $0x480] sm:$0xff]  ;;  %v2047_v13 = vld [vmem:[#allocation8 + $0xc8] sm:$0xff]  ;;  %v2052_v21 = vld [vmem:[#allocation8 + $0xf0] sm:$0xff] }
 0x1db   :  { %1343 = vmatmul.mubr.f32.gmra.mrb[28].mxu1 %v4287_v40 }
 0x1dc   :  { %3301 = vmatpush1.bf16.msra.mxu1 %v3300_v15  ;;  %1348 = vmatprep.mubr.f32.mxu1 %v3894_v0  ;;  %v3330_v15 = vpack.c.bf16 %v1596_v49, %v1594_v48  ;;  %v1552_v48 = vrot.slane %v4282_v20, 6  ;;  %v1752_v49 = vld [vmem:[#allocation7 + $0x4a8] sm:$0xff] }
 0x1dd   :  { %3303 = vmatprep.subr.bf16.mxu1 %v3302_v51  ;;  %v1593_v51 = vld [vmem:[#allocation7 + $0x3c0] sm:$0xff] }
 0x1de   :  { %v1553_v56 = vsel %vm1542_vm5, %v1550_v10, %v1552_v48 }
 0x1df   :  { %1349 = vmatmul.mubr.f32.gmra.mrb[30].mxu1 %v4290_v45 }
 0x1e0   :  { %3305 = vmatpush1.bf16.msra.mxu1 %v3304_v58  ;;  %1477 = vmatprep.mubr.f32.mxu1 %v3894_v0  ;;  %v1600_v58 = vld [vmem:[#allocation7 + $0x3f8] sm:$0xff] }
 0x1e1   :  { %3307 = vmatprep.subr.bf16.mxu1 %v3306_v27  ;;  %v3332_v27 = vpack.c.bf16 %v1595_v26, %v1593_v51  ;;  %v3334_v29 = vpack.c.bf16 %v1600_v58, %v1598_v57  ;;  %v1751_v26 = vld [vmem:[#allocation7 + $0x4a0] sm:$0xff]  ;;  %v1554_v57 = vrot.slane %v4287_v40, 6  ;;  %v1756_v58 = vld [vmem:[#allocation7 + $0x4c8] sm:$0xff] }
 0x1e3   :  { %1478 = vmatmul.mubr.f32.vlgmr.msra.gmra.mrb[16].mxu1 %v1357_v25  ;;  %v1733_v25 = vld [vmem:[#allocation7 + $0x410] sm:$0xff] }
 0x1e4   :  { %3309 = vmatpush1.bf16.msra.mxu1 %v3308_v63  ;;  %1483 = vmatprep.mubr.f32.mxu1 %v3894_v0  ;;  %v1734_v63 = vld [vmem:[#allocation7 + $0x418] sm:$0xff]  ;;  %v3340_v54 = vpack.c.bf16 %v1733_v25, %v1731_v3 }
 0x1e5   :  { %3311 = vmatprep.subr.bf16.mxu1 %v3310_v2  ;;  %v3336_v2 = vpack.c.bf16 %v1599_v32, %v1597_v59  ;;  %v3338_v24 = vpack.c.bf16 %v1734_v63, %v1732_v61  ;;  %v1755_v32 = vld [vmem:[#allocation7 + $0x4c0] sm:$0xff]  ;;  %v1555_v61 = vsel %vm1542_vm5, %v1552_v48, %v1554_v57  ;;  %v1556_v63 = vrot.slane %v4290_v45, 6 }
 0x1e7   :  { %1484 = vmatmul.mubr.f32.gmra.mrb[18].mxu1 %v1359_v46  ;;  %v1735_v46 = vld [vmem:[#allocation7 + $0x420] sm:$0xff] }
 0x1e8   :  { %3313 = vmatpush1.bf16.msra.mxu1 %v3312_v42  ;;  %1489 = vmatprep.mubr.f32.mxu1 %v3894_v0  ;;  %v1738_v42 = vld [vmem:[#allocation7 + $0x438] sm:$0xff] }
 0x1e9   :  { %3315 = vmatprep.subr.bf16.mxu1 %v3314_v6  ;;  %v1543_v6 = vrot.slane %v4252_v28, 6  ;;  %v3342_v11 = vpack.c.bf16 %v1738_v42, %v1736_v5  ;;  %v1557_v5 = vsel %vm1542_vm5, %v1554_v57, %v1556_v63 }
 0x1eb   :  { %1490 = vmatmul.mubr.f32.gmra.mrb[20].mxu1 %v1361_v8  ;;  %v1545_v62 = vsel %vm1542_vm5, %v1543_v6, %v1544_v36  ;;  %v1741_v8 = vld [vmem:[#allocation7 + $0x450] sm:$0xff] }
 0x1ec   :  { %3317 = vmatpush1.bf16.msra.mxu1 %v3316_v16  ;;  %1495 = vmatprep.mubr.f32.mxu1 %v3894_v0  ;;  %v1742_v16 = vld [vmem:[#allocation7 + $0x458] sm:$0xff]  ;;  %v1761_v36 = vld [vmem:[#allocation7 + $0x4f0] sm:$0xff] }
 0x1ed   :  { %3319 = vmatprep.subr.bf16.mxu1 %v3318_v17  ;;  %v3344_v17 = vpack.c.bf16 %v1737_v12, %v1735_v46  ;;  %v3346_v18 = vpack.c.bf16 %v1742_v16, %v1740_v14  ;;  %v2045_v12 = vld [vmem:[#allocation8 + $0xb8] sm:$0xff]  ;;  %v2048_v16 = vld [vmem:[#allocation8 + $0xd0] sm:$0xff] }
 0x1ef   :  { %1496 = vmatmul.mubr.f32.gmra.mrb[22].mxu1 %v1363_v33  ;;  %v1745_v33 = vld [vmem:[#allocation7 + $0x470] sm:$0xff] }
 0x1f0   :  { %3321 = vmatpush1.bf16.msra.mxu1 %v3320_v23  ;;  %1501 = vmatprep.mubr.f32.mxu1 %v3894_v0  ;;  %v1746_v23 = vld [vmem:[#allocation7 + $0x478] sm:$0xff] }
 0x1f1   :  { %3323 = vmatprep.subr.bf16.mxu1 %v3322_v30  ;;  %v3348_v30 = vpack.c.bf16 %v1741_v8, %v1739_v55  ;;  %v3350_v31 = vpack.c.bf16 %v1746_v23, %v1744_v22  ;;  %v2050_v55 = vld [vmem:[#allocation8 + $0xe0] sm:$0xff]  ;;  %v2051_v8 = vld [vmem:[#allocation8 + $0xe8] sm:$0xff]  ;;  %v2053_v22 = vld [vmem:[#allocation8 + $0xf8] sm:$0xff] }
 0x1f2   :  { %v3398_v23 = vpack.c.bf16 %v2053_v22, %v2052_v21 }
 0x1f3   :  { %1502 = vmatmul.mubr.f32.gmra.mrb[24].mxu1 %v1365_v44  ;;  %v1749_v44 = vld [vmem:[#allocation7 + $0x490] sm:$0xff] }
 0x1f4   :  { %3325 = vmatpush1.bf16.msra.mxu1 %v3324_v38  ;;  %1507 = vmatprep.mubr.f32.mxu1 %v3894_v0  ;;  %v1750_v38 = vld [vmem:[#allocation7 + $0x498] sm:$0xff] }
 0x1f5   :  { %3327 = vmatprep.subr.bf16.mxu1 %v3326_v39  ;;  %v3352_v39 = vpack.c.bf16 %v1745_v33, %v1743_v9  ;;  %v3354_v41 = vpack.c.bf16 %v1750_v38, %v1748_v37 }
 0x1f7   :  { %1508 = vmatmul.mubr.f32.gmra.mrb[26].mxu1 %v1367_v53  ;;  %v1753_v53 = vld [vmem:[#allocation7 + $0x4b0] sm:$0xff] }
 0x1f8   :  { %3329 = vmatpush1.bf16.msra.mxu1 %v3328_v50  ;;  %1513 = vmatprep.mubr.f32.mxu1 %v3894_v0  ;;  %v1754_v50 = vld [vmem:[#allocation7 + $0x4b8] sm:$0xff] }
 0x1f9   :  { %3331 = vmatprep.subr.bf16.mxu1 %v3330_v15  ;;  %v3356_v15 = vpack.c.bf16 %v1749_v44, %v1747_v43  ;;  %v3358_v51 = vpack.c.bf16 %v1754_v50, %v1752_v49  ;;  %v4400_v49 = vld [vmem:[%s4534_s4] ss:$0 sm:$0xff] }
 0x1fb   :  { %1514 = vmatmul.mubr.f32.gmra.mrb[28].mxu1 %v1369_v60  ;;  %v1757_v60 = vld [vmem:[#allocation7 + $0x4d0] sm:$0xff] }
 0x1fc   :  { %3333 = vmatpush1.bf16.msra.mxu1 %v3332_v27  ;;  %1519 = vmatprep.mubr.f32.mxu1 %v3894_v0  ;;  %v1758_v27 = vld [vmem:[#allocation7 + $0x4d8] sm:$0xff]  ;;  %v3364_v3 = vpack.c.bf16 %v1757_v60, %v1755_v32 }
 0x1fd   :  { %3335 = vmatprep.subr.bf16.mxu1 %v3334_v29  ;;  %v3360_v29 = vpack.c.bf16 %v1753_v53, %v1751_v26  ;;  %v3362_v59 = vpack.c.bf16 %v1758_v27, %v1756_v58 }
 0x1ff   :  { %1520 = vmatmul.mubr.f32.gmra.mrb[30].mxu1 %v1379_v4  ;;  %v1759_v4 = vld [vmem:[#allocation7 + $0x4e0] sm:$0xff] }
 0x200   :  { %3337 = vmatpush1.bf16.msra.mxu1 %v3336_v2  ;;  %1665 = vmatprep.mubr.f32.mxu1 %v3894_v0  ;;  %v1760_v2 = vld [vmem:[#allocation7 + $0x4e8] sm:$0xff]  ;;  %v3368_v42 = vpack.c.bf16 %v1761_v36, %v1759_v4 }
 0x201   :  { %3339 = vmatprep.subr.bf16.mxu1 %v3338_v24  ;;  %v1762_v24 = vld [vmem:[#allocation7 + $0x4f8] sm:$0xff] }
 0x202   :  { %v3366_v25 = vpack.c.bf16 %v1762_v24, %v1760_v2 }
 0x203   :  { %1666 = vmatmul.mubr.f32.vlgmr.msra.gmra.mrb[16].mxu1 %v1545_v62 }
 0x204   :  { %3341 = vmatpush1.bf16.msra.mxu1 %v3340_v54  ;;  %1671 = vmatprep.mubr.f32.mxu1 %v3894_v0  ;;  %v1567_v54 = vsel %vm1542_vm5, %v1556_v63, %v1543_v6  ;;  %v2041_v6 = vld [vmem:[#allocation8 + $0x98] sm:$0xff] }
 0x205   :  { %3343 = vmatprep.subr.bf16.mxu1 %v3342_v11  ;;  %v2042_v11 = vld [vmem:[#allocation8 + $0xa0] sm:$0xff] }
 0x207   :  { %1672 = vmatmul.mubr.f32.gmra.mrb[18].mxu1 %v1547_v19  ;;  %v3394_v19 = vpack.c.bf16 %v2051_v8, %v2050_v55 }
 0x208   :  { %3345 = vmatpush1.bf16.msra.mxu1 %v3344_v17  ;;  %1677 = vmatprep.mubr.f32.mxu1 %v3894_v0  ;;  %v2049_v17 = vld [vmem:[#allocation8 + $0xd8] sm:$0xff] }
 0x209   :  { %3347 = vmatprep.subr.bf16.mxu1 %v3346_v18  ;;  %v3390_v18 = vpack.c.bf16 %v2049_v17, %v2048_v16 }
 0x20b   :  { %1678 = vmatmul.mubr.f32.gmra.mrb[20].mxu1 %v1549_v34 }
 0x20c   :  { %3349 = vmatpush1.bf16.msra.mxu1 %v3348_v30  ;;  %1683 = vmatprep.mubr.f32.mxu1 %v3894_v0  ;;  %v1988_v30 = vld [vmem:[#allocation8] sm:$0xff] }
 0x20d   :  { %3351 = vmatprep.subr.bf16.mxu1 %v3350_v31  ;;  %v1989_v31 = vld [vmem:[#allocation8 + $0x8] sm:$0xff] }
 0x20e   :  { %v4390_v9 = vpack.c.bf16 %v1989_v31, %v1988_v30 }
 0x20f   :  { %1684 = vmatmul.mubr.f32.gmra.mrb[22].mxu1 %v1551_v47 }
 0x210   :  { %3353 = vmatpush1.bf16.msra.mxu1 %v3352_v39  ;;  %1689 = vmatprep.mubr.f32.mxu1 %v3894_v0 }
 0x211   :  { %3355 = vmatprep.subr.bf16.mxu1 %v3354_v41 }
 0x213   :  { %1690 = vmatmul.mubr.f32.gmra.mrb[24].mxu1 %v1553_v56 }
 0x214   :  { %3357 = vmatpush1.bf16.msra.mxu1 %v3356_v15  ;;  %1695 = vmatprep.mubr.f32.mxu1 %v3894_v0 }
 0x215   :  { %3359 = vmatprep.subr.bf16.mxu1 %v3358_v51 }
 0x217   :  { %1696 = vmatmul.mubr.f32.gmra.mrb[26].mxu1 %v1555_v61 }
 0x218   :  { %3361 = vmatpush1.bf16.msra.mxu1 %v3360_v29  ;;  %1701 = vmatprep.mubr.f32.mxu1 %v3894_v0 }
 0x219   :  { %3363 = vmatprep.subr.bf16.mxu1 %v3362_v59 }
 0x21b   :  { %1702 = vmatmul.mubr.f32.gmra.mrb[28].mxu1 %v1557_v5 }
 0x21c   :  { %3365 = vmatpush1.bf16.msra.mxu1 %v3364_v3  ;;  %1707 = vmatprep.mubr.f32.mxu1 %v3894_v0 }
 0x21d   :  { %3367 = vmatprep.subr.bf16.mxu1 %v3366_v25 }
 0x21f   :  { %1708 = vmatmul.mubr.f32.gmra.mrb[30].mxu1 %v1567_v54 }
 0x220   :  { %3369 = vmatpush1.bf16.msra.mxu1 %v3368_v42  ;;  %1827 = vmatprep.mubr.f32.mxu1 %v3894_v0 }
 0x223   :  { %1828 = vmatmul.mubr.f32.vlgmr.msra.gmra.mrb[16].mxu1 %v4255_v35  ;;  %v2038_v35 = vld [vmem:[#allocation8 + $0x80] sm:$0xff] }
 0x224   :  { %1833 = vmatprep.mubr.f32.mxu1 %v3894_v0 }
 0x227   :  { %1834 = vmatmul.mubr.f32.gmra.mrb[18].mxu1 %v4265_v52  ;;  %v2039_v52 = vld [vmem:[#allocation8 + $0x88] sm:$0xff] }
 0x228   :  { %1839 = vmatprep.mubr.f32.mxu1 %v3894_v0 }
 0x22b   :  { %1840 = vmatmul.mubr.f32.gmra.mrb[20].mxu1 %v4272_v1  ;;  %v3370_v1 = vpack.c.bf16 %v2039_v52, %v2038_v35 }
 0x22c   :  { %1845 = vmatprep.mubr.f32.mxu1 %v3894_v0 }
 0x22d   :  { %3371 = vmatprep.subr.bf16.mxu0 %v3370_v1 }
 0x22e   :  { %3373 = vmatpush3.bf16.msra.mxu0 %v3370_v1 }
 0x22f   :  { %1846 = vmatmul.mubr.f32.gmra.mrb[22].mxu1 %v4277_v7  ;;  %v2040_v7 = vld [vmem:[#allocation8 + $0x90] sm:$0xff] }
 0x230   :  { %1851 = vmatprep.mubr.f32.mxu1 %v3894_v0 }
 0x233   :  { %1852 = vmatmul.mubr.f32.gmra.mrb[24].mxu1 %v4282_v20  ;;  %v3374_v20 = vpack.c.bf16 %v2041_v6, %v2040_v7 }
 0x234   :  { %1857 = vmatprep.mubr.f32.mxu1 %v3894_v0 }
 0x235   :  { %3375 = vmatprep.subr.bf16.mxu0 %v3374_v20 }
 0x236   :  { %3377 = vmatpush3.bf16.msra.mxu0 %v3374_v20 }
 0x237   :  { %1858 = vmatmul.mubr.f32.gmra.mrb[26].mxu1 %v4287_v40  ;;  %v2043_v40 = vld [vmem:[#allocation8 + $0xa8] sm:$0xff] }
 0x238   :  { %1863 = vmatprep.mubr.f32.mxu1 %v3894_v0  ;;  %v3378_v46 = vpack.c.bf16 %v2043_v40, %v2042_v11 }
 0x23a   :  { %3379 = vmatprep.subr.bf16.mxu0 %v3378_v46 }
 0x23b   :  { %1864 = vmatmul.mubr.f32.gmra.mrb[28].mxu1 %v4290_v45  ;;  %3381 = vmatpush3.bf16.msra.mxu0 %v3378_v46  ;;  %v2044_v45 = vld [vmem:[#allocation8 + $0xb0] sm:$0xff] }
 0x23c   :  { %1869 = vmatprep.mubr.f32.mxu1 %v3894_v0  ;;  %v3382_v62 = vpack.c.bf16 %v2045_v12, %v2044_v45 }
 0x23e   :  { %3383 = vmatprep.subr.bf16.mxu0 %v3382_v62 }
 0x23f   :  { %1870 = vmatmul.mubr.f32.gmra.mrb[30].mxu1 %v4252_v28  ;;  %3385 = vmatpush3.bf16.msra.mxu0 %v3382_v62  ;;  %v2046_v28 = vld [vmem:[#allocation8 + $0xc0] sm:$0xff] }
 0x240   :  { %v3386_v14 = vpack.c.bf16 %v2047_v13, %v2046_v28  ;;  %3167 = vmatprep.mubr.msk.f32.mxu1 %vm3896_vm6, %v3894_v0 }
 0x242   :  { %3387 = vmatprep.subr.bf16.mxu0 %v3386_v14 }
 0x243   :  { %3389 = vmatpush3.bf16.msra.mxu0 %v3386_v14 }
 0x244   :  { %3391 = vmatprep.subr.bf16.mxu0 %v3390_v18 }
 0x247   :  { %3393 = vmatpush3.bf16.msra.mxu0 %v3390_v18 }
 0x248   :  { %3395 = vmatprep.subr.bf16.mxu0 %v3394_v19 }
 0x24b   :  { %3397 = vmatpush3.bf16.msra.mxu0 %v3394_v19 }
 0x24c   :  { %3399 = vmatprep.subr.bf16.mxu0 %v3398_v23 }
 0x24f   :  { %3401 = vmatpush3.bf16.msra.mxu0 %v3398_v23 }
 0x250   :  { %3403 = vmatprep.subr.bf16.mxu0 %v4390_v9 }
 0x2f6   :  { %v1829_v33 = vpop.f32.mrb[16].mxu1 }
 0x2f7   :  { %v1831_v34 = vpop.f32.mrb[17].mxu1 }
 0x2f8   :  { %v4393_v10 = vmax.f32 %v1829_v33, %v1831_v34 }
 0x2fa   :  { %v1835_v37 = vpop.f32.mrb[18].mxu1  ;;  %v1908_v41 = vrot.slane %v4393_v10, 2 }
 0x2fb   :  { %v1837_v38 = vpop.f32.mrb[19].mxu1 }
 0x2fc   :  { %v1893_v39 = vmax.f32 %v1835_v37, %v1837_v38 }
 0x2fe   :  { %v1909_v43 = vrot.slane %v1893_v39, 2  ;;  %v1841_v44 = vpop.f32.mrb[20].mxu1 }
 0x2ff   :  { %v1843_v47 = vpop.f32.mrb[21].mxu1 }
 0x300   :  { %v1910_v48 = vsel %vm413_vm1, %v1908_v41, %v1909_v43  ;;  %v1894_v50 = vmax.f32 %v1841_v44, %v1843_v47 }
 0x301   :  { %v1933_v15 = vmax.f32 %v4393_v10, %v1910_v48 }
 0x302   :  { %v1911_v51 = vrot.slane %v1894_v50, 2  ;;  %v1847_v26 = vpop.f32.mrb[22].mxu1 }
 0x303   :  { %v1948_v53 = vadd.f32 %v4400_v49, %v1933_v15  ;;  %v1849_v56 = vpop.f32.mrb[23].mxu1 }
 0x304   :  { %v1912_v57 = vsel %vm413_vm1, %v1909_v43, %v1911_v51  ;;  %v1895_v58 = vmax.f32 %v1847_v26, %v1849_v56  ;;  %v1991_v26 = vld [vmem:[#allocation8 + $0x18] sm:$0xff] }
 0x305   :  { %v1956_v27 = vmul.f32 0.5, %v1948_v53  ;;  %v1934_v29 = vmax.f32 %v1893_v39, %v1912_v57 }
 0x306   :  { %v1913_v59 = vrot.slane %v1895_v58, 2  ;;  %v1853_v32 = vpop.f32.mrb[24].mxu1 }
 0x307   :  { %3727 = vtanh.f32 %v1956_v27  ;;  %v1949_v60 = vadd.f32 %v4400_v49, %v1934_v29  ;;  %v1855_v61 = vpop.f32.mrb[25].mxu1 }
 0x308   :  { %v1914_v63 = vsel %vm413_vm1, %v1911_v51, %v1913_v59  ;;  %v1896_v2 = vmax.f32 %v1853_v32, %v1855_v61  ;;  %v1990_v51 = vld [vmem:[#allocation8 + $0x10] sm:$0xff]  ;;  %v1992_v32 = vld [vmem:[#allocation8 + $0x20] sm:$0xff] }
 0x309   :  { %v1957_v24 = vmul.f32 0.5, %v1949_v60  ;;  %v1935_v3 = vmax.f32 %v1894_v50, %v1914_v63  ;;  %v3406_v29 = vpack.c.bf16 %v1991_v26, %v1990_v51  ;;  %v1993_v60 = vld [vmem:[#allocation8 + $0x28] sm:$0xff]  ;;  %v2259_v26 = vld [vmem:[#allocation8 + $0x130] sm:$0xff] }
 0x30a   :  { %v1915_v25 = vrot.slane %v1896_v2, 2  ;;  %v1859_v4 = vpop.f32.mrb[26].mxu1 }
 0x30b   :  { %3729 = vtanh.f32 %v1957_v24  ;;  %v1950_v36 = vadd.f32 %v4400_v49, %v1935_v3  ;;  %v1861_v5 = vpop.f32.mrb[27].mxu1  ;;  %v3410_v24 = vpack.c.bf16 %v1993_v60, %v1992_v32  ;;  %v2264_v32 = vld [vmem:[#allocation8 + $0x158] sm:$0xff] }
 0x30c   :  { %v1916_v42 = vsel %vm413_vm1, %v1913_v59, %v1915_v25  ;;  %v1897_v54 = vmax.f32 %v1859_v4, %v1861_v5  ;;  %v1994_v4 = vld [vmem:[#allocation8 + $0x30] sm:$0xff] }
 0x30d   :  { %v1958_v35 = vmul.f32 0.5, %v1950_v36  ;;  %v1936_v52 = vmax.f32 %v1895_v58, %v1916_v42  ;;  %v1995_v36 = vld [vmem:[#allocation8 + $0x38] sm:$0xff] }
 0x30e   :  { %v1917_v1 = vrot.slane %v1897_v54, 2  ;;  %v1865_v7 = vpop.f32.mrb[28].mxu1 }
 0x30f   :  { %3731 = vtanh.f32 %v1958_v35  ;;  %v1951_v6 = vadd.f32 %v4400_v49, %v1936_v52  ;;  %v1867_v20 = vpop.f32.mrb[29].mxu1 }
 0x310   :  { %v1918_v11 = vsel %vm413_vm1, %v1915_v25, %v1917_v1  ;;  %v1898_v40 = vmax.f32 %v1865_v7, %v1867_v20  ;;  %v1997_v7 = vld [vmem:[#allocation8 + $0x48] sm:$0xff] }
 0x311   :  { %v3728_v46 = vpop.eup %3727  ;;  %v1959_v45 = vmul.f32 0.5, %v1951_v6  ;;  %v1937_v12 = vmax.f32 %v1896_v2, %v1918_v11 }
 0x312   :  { %v1972_v62 = vmul.f32 0.5, %v3728_v46  ;;  %v1919_v28 = vrot.slane %v1898_v40, 2  ;;  %v1871_v13 = vpop.f32.mrb[30].mxu1 }
 0x313   :  { %3733 = vtanh.f32 %v1959_v45  ;;  %v1952_v14 = vadd.f32 %v4400_v49, %v1937_v12  ;;  %v1873_v16 = vpop.f32.mrb[31].mxu1 }
 0x314   :  { %v1920_v17 = vsel %vm413_vm1, %v1917_v1, %v1919_v28  ;;  %v1899_v18 = vmax.f32 %v1871_v13, %v1873_v16  ;;  %v4413_v23 = vadd.f32 0.5, %v1972_v62  ;;  %v1996_v1 = vld [vmem:[#allocation8 + $0x40] sm:$0xff]  ;;  %v1999_v13 = vld [vmem:[#allocation8 + $0x58] sm:$0xff] }
 0x315   :  { %v3730_v55 = vpop.eup %3729  ;;  %v1960_v8 = vmul.f32 0.5, %v1952_v14  ;;  %v1938_v19 = vmax.f32 %v1897_v54, %v1920_v17  ;;  %v3418_v45 = vpack.c.bf16 %v1997_v7, %v1996_v1  ;;  %v2374_v1 = vld [vmem:[#allocation8 + $0x198] sm:$0xff] }
 0x316   :  { %v1973_v21 = vmul.f32 0.5, %v3730_v55  ;;  %v1921_v22 = vrot.slane %v1899_v18, 2  ;;  %v2012_v44 = vrot.slane %v4413_v23, 4 }
 0x317   :  { %3735 = vtanh.f32 %v1960_v8  ;;  %v1953_v30 = vadd.f32 %v4400_v49, %v1938_v19  ;;  %v2000_v8 = vld [vmem:[#allocation8 + $0x60] sm:$0xff]  ;;  %v2001_v19 = vld [vmem:[#allocation8 + $0x68] sm:$0xff] }
 0x318   :  { %v1922_v31 = vsel %vm413_vm1, %v1919_v28, %v1921_v22  ;;  %v1932_v33 = vsel %vm413_vm1, %v1921_v22, %v1908_v41  ;;  %v4418_v34 = vadd.f32 0.5, %v1973_v21  ;;  %v1998_v28 = vld [vmem:[#allocation8 + $0x50] sm:$0xff]  ;;  %v3426_v22 = vpack.c.bf16 %v2001_v19, %v2000_v8  ;;  %v2383_v19 = vld [vmem:[#allocation8 + $0x1e0] sm:$0xff] }
 0x319   :  { %v3732_v10 = vpop.eup %3731  ;;  %v1961_v37 = vmul.f32 0.5, %v1953_v30  ;;  %v1939_v38 = vmax.f32 %v1898_v40, %v1922_v31  ;;  %v1940_v39 = vmax.f32 %v1899_v18, %v1932_v33  ;;  %v3422_v18 = vpack.c.bf16 %v1999_v13, %v1998_v28  ;;  %v2002_v31 = vld [vmem:[#allocation8 + $0x70] sm:$0xff]  ;;  %v2003_v33 = vld [vmem:[#allocation8 + $0x78] sm:$0xff]  ;;  %v2379_v28 = vld [vmem:[#allocation8 + $0x1c0] sm:$0xff] }
 0x31a   :  { %v1974_v43 = vmul.f32 0.5, %v3732_v10  ;;  %v2013_v47 = vrot.slane %v4418_v34, 4  ;;  %v3430_v10 = vpack.c.bf16 %v2003_v33, %v2002_v31  ;;  %v2380_v13 = vld [vmem:[#allocation8 + $0x1c8] sm:$0xff]  ;;  %v2385_v33 = vld [vmem:[#allocation8 + $0x1f0] sm:$0xff] }
 0x31b   :  { %3737 = vtanh.f32 %v1961_v37  ;;  %v1954_v48 = vadd.f32 %v4400_v49, %v1939_v38  ;;  %v1955_v50 = vadd.f32 %v4400_v49, %v1940_v39  ;;  %v2253_v37 = vld [vmem:[#allocation8 + $0x100] sm:$0xff]  ;;  %v2254_v38 = vld [vmem:[#allocation8 + $0x108] sm:$0xff] }
 0x31c   :  { %v4424_v15 = vadd.f32 0.5, %v1974_v43  ;;  %v4429_v41 = vsel %vm761_vm3, %v2012_v44, %v2013_v47  ;;  %v3434_v39 = vpack.c.bf16 %v2254_v38, %v2253_v37  ;;  %v2255_v43 = vld [vmem:[#allocation8 + $0x110] sm:$0xff]  ;;  %v2489_v38 = vld [vmem:[#allocation8 + $0x200] sm:$0xff] }
 0x31d   :  { %v3734_v53 = vpop.eup %3733  ;;  %v1962_v56 = vmul.f32 0.5, %v1954_v48  ;;  %v1963_v57 = vmul.f32 0.5, %v1955_v50  ;;  %2947 = vmatprep.mubr.f32.mxu0 %v4429_v41  ;;  %v2257_v48 = vld [vmem:[#allocation8 + $0x120] sm:$0xff]  ;;  %v2258_v50 = vld [vmem:[#allocation8 + $0x128] sm:$0xff] }
 0x31e   :  { %v1975_v58 = vmul.f32 0.5, %v3734_v53  ;;  %v2015_v27 = vrot.slane %v4424_v15, 4  ;;  %v3442_v51 = vpack.c.bf16 %v2258_v50, %v2257_v48  ;;  %v2260_v53 = vld [vmem:[#allocation8 + $0x138] sm:$0xff]  ;;  %v2493_v48 = vld [vmem:[#allocation8 + $0x220] sm:$0xff]  ;;  %v2494_v50 = vld [vmem:[#allocation8 + $0x228] sm:$0xff] }
 0x31f   :  { %3739 = vtanh.f32 %v1962_v56  ;;  %v3446_v56 = vpack.c.bf16 %v2260_v53, %v2259_v26  ;;  %v2495_v26 = vld [vmem:[#allocation8 + $0x230] sm:$0xff]  ;;  %v2496_v53 = vld [vmem:[#allocation8 + $0x238] sm:$0xff] }
 0x320   :  { %3741 = vtanh.f32 %v1963_v57  ;;  %v4434_v49 = vsel %vm761_vm3, %v2013_v47, %v2015_v27  ;;  %v4436_v59 = vadd.f32 0.5, %v1975_v58  ;;  %v2256_v47 = vld [vmem:[#allocation8 + $0x118] sm:$0xff]  ;;  %v2261_v57 = vld [vmem:[#allocation8 + $0x140] sm:$0xff]  ;;  %v2262_v58 = vld [vmem:[#allocation8 + $0x148] sm:$0xff] }
 0x321   :  { %v3736_v61 = vpop.eup %3735  ;;  %2948 = vmatmul.mubr.f32.vlgmr.msra.gmra.mrb[16].mxu0 %v4434_v49 }
 0x322   :  { %v1976_v63 = vmul.f32 0.5, %v3736_v61  ;;  %3405 = vmatpush3.bf16.msra.mxu0 %v4390_v9  ;;  %v2017_v2 = vrot.slane %v4436_v59, 4  ;;  %v3414_v9 = vpack.c.bf16 %v1995_v36, %v1994_v4  ;;  %v2265_v61 = vld [vmem:[#allocation8 + $0x160] sm:$0xff]  ;;  %v2268_v4 = vld [vmem:[#allocation8 + $0x178] sm:$0xff] }
 0x323   :  { %3407 = vmatprep.subr.bf16.mxu0 %v3406_v29 }
 0x324   :  { %v4442_v3 = vsel %vm761_vm3, %v2015_v27, %v2017_v2  ;;  %v4444_v25 = vadd.f32 0.5, %v1976_v63  ;;  %v3450_v27 = vpack.c.bf16 %v2262_v58, %v2261_v57  ;;  %v2266_v63 = vld [vmem:[#allocation8 + $0x168] sm:$0xff]  ;;  %v2497_v57 = vld [vmem:[#allocation8 + $0x240] sm:$0xff] }
 0x325   :  { %v3738_v5 = vpop.eup %3737  ;;  %2950 = vmatprep.mubr.f32.mxu0 %v4442_v3  ;;  %v2498_v58 = vld [vmem:[#allocation8 + $0x248] sm:$0xff] }
 0x326   :  { %v1977_v42 = vmul.f32 0.5, %v3738_v5  ;;  %3409 = vmatpush3.bf16.msra.mxu0 %v3406_v29  ;;  %v2019_v54 = vrot.slane %v4444_v25, 4  ;;  %v2263_v29 = vld [vmem:[#allocation8 + $0x150] sm:$0xff]  ;;  %v2371_v5 = vld [vmem:[#allocation8 + $0x180] sm:$0xff] }
 0x327   :  { %3411 = vmatprep.subr.bf16.mxu0 %v3410_v24  ;;  %v3454_v60 = vpack.c.bf16 %v2264_v32, %v2263_v29  ;;  %v2502_v29 = vld [vmem:[#allocation8 + $0x268] sm:$0xff] }
 0x328   :  { %v4449_v35 = vsel %vm761_vm3, %v2017_v2, %v2019_v54  ;;  %v4451_v52 = vadd.f32 0.5, %v1977_v42  ;;  %v3458_v2 = vpack.c.bf16 %v2266_v63, %v2265_v61  ;;  %v2372_v42 = vld [vmem:[#allocation8 + $0x188] sm:$0xff]  ;;  %v3895_v63 = vmov 0.0|0.0  }
 0x329   :  { %v3740_v6 = vpop.eup %3739  ;;  %2951 = vmatmul.mubr.f32.gmra.mrb[18].mxu0 %v4449_v35  ;;  %3530 = vmatprep.subr.bf16.mxu1 %v3895_v63 }
 0x32a   :  { %v3742_v20 = vpop.eup %3741  ;;  %v1978_v11 = vmul.f32 0.5, %v3740_v6  ;;  %3413 = vmatpush3.bf16.msra.mxu0 %v3410_v24  ;;  %v2021_v40 = vrot.slane %v4451_v52, 4  ;;  %v2267_v24 = vld [vmem:[#allocation8 + $0x170] sm:$0xff]  ;;  %v2375_v6 = vld [vmem:[#allocation8 + $0x1a0] sm:$0xff] }
 0x32b   :  { %v1979_v46 = vmul.f32 0.5, %v3742_v20  ;;  %3415 = vmatprep.subr.bf16.mxu0 %v3414_v9  ;;  %v3462_v36 = vpack.c.bf16 %v2268_v4, %v2267_v24  ;;  %v2376_v20 = vld [vmem:[#allocation8 + $0x1a8] sm:$0xff] }
 0x32c   :  { %v4456_v12 = vsel %vm761_vm3, %v2019_v54, %v2021_v40  ;;  %v4458_v62 = vadd.f32 0.5, %v1978_v11  ;;  %v3466_v54 = vpack.c.bf16 %v2372_v42, %v2371_v5  ;;  %v3474_v11 = vpack.c.bf16 %v2376_v20, %v2375_v6  ;;  %v2631_v5 = vld [vmem:[#allocation10 + $0x40] sm:$0xff]  ;;  %v2632_v42 = vld [vmem:[#allocation10 + $0x48] sm:$0xff] }
 0x32d   :  { %v4460_v14 = vadd.f32 0.5, %v1979_v46  ;;  %2953 = vmatprep.mubr.f32.mxu0 %v4456_v12  ;;  %v2378_v46 = vld [vmem:[#allocation8 + $0x1b8] sm:$0xff] }
 0x32e   :  { %3417 = vmatpush3.bf16.msra.mxu0 %v3414_v9  ;;  %v2023_v16 = vrot.slane %v4458_v62, 4  ;;  %v2373_v9 = vld [vmem:[#allocation8 + $0x190] sm:$0xff] }
 0x32f   :  { %3419 = vmatprep.subr.bf16.mxu0 %v3418_v45  ;;  %v2025_v17 = vrot.slane %v4460_v14, 4  ;;  %v3470_v7 = vpack.c.bf16 %v2374_v1, %v2373_v9  ;;  %v2633_v9 = vld [vmem:[#allocation10 + $0x50] sm:$0xff]  ;;  %v2634_v1 = vld [vmem:[#allocation10 + $0x58] sm:$0xff] }
 0x330   :  { %v4466_v55 = vsel %vm761_vm3, %v2021_v40, %v2023_v16  ;;  %v2377_v40 = vld [vmem:[#allocation8 + $0x1b0] sm:$0xff]  ;;  %v3546_v6 = vpack.c.bf16 %v2634_v1, %v2633_v9 }
 0x331   :  { %2954 = vmatmul.mubr.f32.gmra.mrb[20].mxu0 %v4466_v55  ;;  %v4470_v21 = vsel %vm761_vm3, %v2023_v16, %v2025_v17  ;;  %v4476_v30 = vsel %vm761_vm3, %v2025_v17, %v2012_v44  ;;  %v3438_v44 = vpack.c.bf16 %v2256_v47, %v2255_v43  ;;  %v3482_v16 = vpack.c.bf16 %v2380_v13, %v2379_v28  ;;  %v2381_v17 = vld [vmem:[#allocation8 + $0x1d0] sm:$0xff]  ;;  %v2638_v28 = vld [vmem:[#allocation10 + $0x78] sm:$0xff] }
 0x332   :  { %3421 = vmatpush3.bf16.msra.mxu0 %v3418_v45  ;;  %2956 = vmatprep.mubr.f32.mxu0 %v4470_v21  ;;  %v3478_v45 = vpack.c.bf16 %v2378_v46, %v2377_v40  ;;  %v2491_v47 = vld [vmem:[#allocation8 + $0x210] sm:$0xff]  ;;  %v2636_v40 = vld [vmem:[#allocation10 + $0x68] sm:$0xff] }
 0x333   :  { %3423 = vmatprep.subr.bf16.mxu0 %v3422_v18 }
 0x335   :  { %2957 = vmatmul.mubr.f32.gmra.mrb[22].mxu0 %v4476_v30 }
 0x336   :  { %3425 = vmatpush3.bf16.msra.mxu0 %v3422_v18  ;;  %2991 = vmatprep.mubr.f32.mxu0 %v4413_v23  ;;  %v2382_v18 = vld [vmem:[#allocation8 + $0x1d8] sm:$0xff] }
 0x337   :  { %3427 = vmatprep.subr.bf16.mxu0 %v3426_v22  ;;  %v3486_v8 = vpack.c.bf16 %v2382_v18, %v2381_v17 }
 0x33a   :  { %3429 = vmatpush3.bf16.msra.mxu0 %v3426_v22  ;;  %v2384_v22 = vld [vmem:[#allocation8 + $0x1e8] sm:$0xff] }
 0x33b   :  { %3431 = vmatprep.subr.bf16.mxu0 %v3430_v10  ;;  %v3490_v31 = vpack.c.bf16 %v2384_v22, %v2383_v19 }
 0x33e   :  { %3433 = vmatpush3.bf16.msra.mxu0 %v3430_v10  ;;  %v2386_v10 = vld [vmem:[#allocation8 + $0x1f8] sm:$0xff] }
 0x33f   :  { %3435 = vmatprep.subr.bf16.mxu0 %v3434_v39  ;;  %v3494_v37 = vpack.c.bf16 %v2386_v10, %v2385_v33 }
 0x341   :  { %2992 = vmatmul.mubr.f32.vlgmr.msra.gmra.mrb[16].mxu0 %v4418_v34 }
 0x342   :  { %2994 = vmatprep.mubr.f32.mxu0 %v4424_v15  ;;  %3437 = vmatpush3.bf16.msra.mxu0 %v3434_v39  ;;  %v2490_v39 = vld [vmem:[#allocation8 + $0x208] sm:$0xff] }
 0x343   :  { %3439 = vmatprep.subr.bf16.mxu0 %v3438_v44  ;;  %v3498_v43 = vpack.c.bf16 %v2490_v39, %v2489_v38 }
 0x345   :  { %2995 = vmatmul.mubr.f32.gmra.mrb[24].mxu0 %v4436_v59 }
 0x346   :  { %2997 = vmatprep.mubr.f32.mxu0 %v4444_v25  ;;  %3441 = vmatpush3.bf16.msra.mxu0 %v3438_v44  ;;  %v2492_v44 = vld [vmem:[#allocation8 + $0x218] sm:$0xff] }
 0x347   :  { %3443 = vmatprep.subr.bf16.mxu0 %v3442_v51 }
 0x349   :  { %2998 = vmatmul.mubr.f32.gmra.mrb[20].mxu0 %v4451_v52 }
 0x34a   :  { %3000 = vmatprep.mubr.f32.mxu0 %v4458_v62  ;;  %3445 = vmatpush3.bf16.msra.mxu0 %v3442_v51  ;;  %v3506_v51 = vpack.c.bf16 %v2494_v50, %v2493_v48 }
 0x34b   :  { %3447 = vmatprep.subr.bf16.mxu0 %v3446_v56 }
 0x34d   :  { %3001 = vmatmul.mubr.f32.gmra.mrb[26].mxu0 %v4460_v14 }
 0x34e   :  { %3449 = vmatpush3.bf16.msra.mxu0 %v3446_v56  ;;  %3035 = vmatprep.mubr.f32.mxu0 %v4418_v34  ;;  %v3510_v56 = vpack.c.bf16 %v2496_v53, %v2495_v26 }
 0x34f   :  { %3451 = vmatprep.subr.bf16.mxu0 %v3450_v27 }
 0x352   :  { %3453 = vmatpush3.bf16.msra.mxu0 %v3450_v27  ;;  %v2500_v27 = vld [vmem:[#allocation8 + $0x258] sm:$0xff] }
 0x353   :  { %3455 = vmatprep.subr.bf16.mxu0 %v3454_v60 }
 0x356   :  { %3457 = vmatpush3.bf16.msra.mxu0 %v3454_v60  ;;  %v2504_v60 = vld [vmem:[#allocation8 + $0x278] sm:$0xff] }
 0x357   :  { %3459 = vmatprep.subr.bf16.mxu0 %v3458_v2 }
 0x35a   :  { %3461 = vmatpush3.bf16.msra.mxu0 %v3458_v2  ;;  %v2626_v2 = vld [vmem:[#allocation10 + $0x18] sm:$0xff] }
 0x35b   :  { %3463 = vmatprep.subr.bf16.mxu0 %v3462_v36 }
 0x35e   :  { %3465 = vmatpush3.bf16.msra.mxu0 %v3462_v36 }
 0x35f   :  { %3467 = vmatprep.subr.bf16.mxu0 %v3466_v54 }
 0x361   :  { %3036 = vmatmul.mubr.f32.vlgmr.msra.gmra.mrb[16].mxu0 %v4424_v15 }
 0x362   :  { %3038 = vmatprep.mubr.f32.mxu0 %v4436_v59  ;;  %3469 = vmatpush3.bf16.msra.mxu0 %v3466_v54  ;;  %v3543_v54 = vpack.c.bf16 %v2632_v42, %v2631_v5 }
 0x363   :  { %3471 = vmatprep.subr.bf16.mxu0 %v3470_v7 }
 0x365   :  { %3039 = vmatmul.mubr.f32.gmra.mrb[28].mxu0 %v4444_v25 }
 0x366   :  { %3041 = vmatprep.mubr.f32.mxu0 %v4451_v52  ;;  %3473 = vmatpush3.bf16.msra.mxu0 %v3470_v7 }
 0x367   :  { %3475 = vmatprep.subr.bf16.mxu0 %v3474_v11 }
 0x369   :  { %3042 = vmatmul.mubr.f32.gmra.mrb[20].mxu0 %v4458_v62 }
 0x36a   :  { %3044 = vmatprep.mubr.f32.mxu0 %v4460_v14  ;;  %3477 = vmatpush3.bf16.msra.mxu0 %v3474_v11  ;;  %v2635_v11 = vld [vmem:[#allocation10 + $0x60] sm:$0xff] }
 0x36b   :  { %3479 = vmatprep.subr.bf16.mxu0 %v3478_v45  ;;  %v3549_v46 = vpack.c.bf16 %v2636_v40, %v2635_v11 }
 0x36d   :  { %3045 = vmatmul.mubr.f32.gmra.mrb[30].mxu0 %v4413_v23 }
 0x36e   :  { %3481 = vmatpush3.bf16.msra.mxu0 %v3478_v45  ;;  %3079 = vmatprep.mubr.f32.mxu0 %v4434_v49  ;;  %v3502_v49 = vpack.c.bf16 %v2492_v44, %v2491_v47  ;;  %v2637_v45 = vld [vmem:[#allocation10 + $0x70] sm:$0xff] }
 0x36f   :  { %3483 = vmatprep.subr.bf16.mxu0 %v3482_v16  ;;  %v3552_v13 = vpack.c.bf16 %v2638_v28, %v2637_v45 }
 0x372   :  { %3485 = vmatpush3.bf16.msra.mxu0 %v3482_v16 }
 0x373   :  { %3487 = vmatprep.subr.bf16.mxu0 %v3486_v8 }
 0x376   :  { %3489 = vmatpush3.bf16.msra.mxu0 %v3486_v8 }
 0x377   :  { %3491 = vmatprep.subr.bf16.mxu0 %v3490_v31 }
 0x37a   :  { %3493 = vmatpush3.bf16.msra.mxu0 %v3490_v31 }
 0x37b   :  { %3495 = vmatprep.subr.bf16.mxu0 %v3494_v37 }
 0x37e   :  { %3497 = vmatpush3.bf16.msra.mxu0 %v3494_v37 }
 0x37f   :  { %3499 = vmatprep.subr.bf16.mxu0 %v3498_v43 }
 0x381   :  { %3080 = vmatmul.mubr.f32.vlgmr.msra.gmra.mrb[16].mxu0 %v4442_v3  ;;  %v3514_v3 = vpack.c.bf16 %v2498_v58, %v2497_v57 }
 0x382   :  { %3082 = vmatprep.mubr.f32.mxu0 %v4449_v35  ;;  %3501 = vmatpush3.bf16.msra.mxu0 %v3498_v43  ;;  %v2499_v35 = vld [vmem:[#allocation8 + $0x250] sm:$0xff] }
 0x383   :  { %3503 = vmatprep.subr.bf16.mxu0 %v3502_v49 }
 0x385   :  { %3083 = vmatmul.mubr.f32.gmra.mrb[32].mxu0 %v4456_v12  ;;  %v3518_v12 = vpack.c.bf16 %v2500_v27, %v2499_v35 }
 0x386   :  { %3085 = vmatprep.mubr.f32.mxu0 %v4466_v55  ;;  %3505 = vmatpush3.bf16.msra.mxu0 %v3502_v49  ;;  %v2501_v55 = vld [vmem:[#allocation8 + $0x260] sm:$0xff] }
 0x387   :  { %3507 = vmatprep.subr.bf16.mxu0 %v3506_v51  ;;  %v3522_v32 = vpack.c.bf16 %v2502_v29, %v2501_v55 }
 0x389   :  { %3086 = vmatmul.mubr.f32.gmra.mrb[20].mxu0 %v4470_v21  ;;  %v2503_v21 = vld [vmem:[#allocation8 + $0x270] sm:$0xff] }
 0x38a   :  { %3088 = vmatprep.mubr.f32.mxu0 %v4476_v30  ;;  %3509 = vmatpush3.bf16.msra.mxu0 %v3506_v51  ;;  %v3526_v30 = vpack.c.bf16 %v2504_v60, %v2503_v21  ;;  %v2776_v51 = vld [vmem:[%s4536_s6] ss:$0 sm:$0xff]  ;;  %s3855_s6 = scalar_lea.vmem %s2724_s1, 32 }
 0x38b   :  { %3511 = vmatprep.subr.bf16.mxu0 %v3510_v56  ;;  %p3856_p12 = scmp.ne.s32.totalorder %s2724_s1, %s3855_s6  ;;  %p3861_p0 = scmp.lt.s32.totalorder %s3855_s6, %s3855_s6 }
 0x38d   :  { %3089 = vmatmul.mubr.f32.gmra.mrb[34].mxu0 %v4429_v41  ;;  %v2624_v41 = vld [vmem:[#allocation10 + $0x8] sm:$0xff]  ;;  %p3862_p1 = por %p3861_p0, %p3860_p13 }
 0x38e   :  { %3513 = vmatpush3.bf16.msra.mxu0 %v3510_v56  ;;  %3123 = vmatprep.mubr.f32.mxu0 %v4424_v15  ;;  %v2623_v15 = vld [vmem:[#allocation10] sm:$0xff] }
 0x38f   :  { %3515 = vmatprep.subr.bf16.mxu0 %v3514_v3  ;;  %v3531_v61 = vpack.c.bf16 %v2624_v41, %v2623_v15  ;;  %p3863_p2 = pnand %p3862_p1, %p3856_p12 }
 0x391   :  { %3532 = vmatpush3.bf16.msra.mxu1 %v3531_v61 }
 0x392   :  { %3517 = vmatpush3.bf16.msra.mxu0 %v3514_v3  ;;  %3533 = vmatprep.subr.bf16.mxu1 %v3895_v63 }
 0x393   :  { %3519 = vmatprep.subr.bf16.mxu0 %v3518_v12 }
 0x396   :  { %3521 = vmatpush3.bf16.msra.mxu0 %v3518_v12  ;;  %v2777_v12 = vld [vmem:[%s4538_s8] ss:$0 sm:$0xff] }
 0x397   :  { %3523 = vmatprep.subr.bf16.mxu0 %v3522_v32 }
 0x39a   :  { %3525 = vmatpush3.bf16.msra.mxu0 %v3522_v32 }
 0x39b   :  { %3527 = vmatprep.subr.bf16.mxu0 %v3526_v30 }
 0x39e   :  { %3529 = vmatpush3.bf16.msra.mxu0 %v3526_v30 }
 0x3a1   :  { %3124 = vmatmul.mubr.f32.vlgmr.msra.gmra.mrb[16].mxu0 %v4436_v59  ;;  %v2625_v59 = vld [vmem:[#allocation10 + $0x10] sm:$0xff] }
 0x3a2   :  { %3126 = vmatprep.mubr.f32.mxu0 %v4444_v25  ;;  %v3534_v25 = vpack.c.bf16 %v2626_v2, %v2625_v59 }
 0x3a4   :  { %3535 = vmatpush3.bf16.msra.mxu1 %v3534_v25 }
 0x3a5   :  { %3127 = vmatmul.mubr.f32.gmra.mrb[36].mxu0 %v4451_v52  ;;  %3536 = vmatprep.subr.bf16.mxu1 %v3895_v63  ;;  %v2627_v52 = vld [vmem:[#allocation10 + $0x20] sm:$0xff] }
 0x3a6   :  { %3129 = vmatprep.mubr.f32.mxu0 %v4458_v62  ;;  %v2628_v62 = vld [vmem:[#allocation10 + $0x28] sm:$0xff] }
 0x3a9   :  { %3130 = vmatmul.mubr.f32.gmra.mrb[20].mxu0 %v4460_v14  ;;  %v3537_v14 = vpack.c.bf16 %v2628_v62, %v2627_v52 }
 0x3aa   :  { %3132 = vmatprep.mubr.f32.mxu0 %v4413_v23  ;;  %v2629_v23 = vld [vmem:[#allocation10 + $0x30] sm:$0xff] }
 0x3ab   :  { %3538 = vmatpush3.bf16.msra.mxu1 %v3537_v14 }
 0x3ac   :  { %3539 = vmatprep.subr.bf16.mxu1 %v3895_v63 }
 0x3ad   :  { %3133 = vmatmul.mubr.f32.gmra.mrb[38].mxu0 %v4418_v34  ;;  %v2630_v34 = vld [vmem:[#allocation10 + $0x38] sm:$0xff] }
 0x3ae   :  { %v3540_v36 = vpack.c.bf16 %v2630_v34, %v2629_v23 }
 0x3b0   :  { %3541 = vmatpush3.bf16.msra.mxu1 %v3540_v36 }
 0x3b1   :  { %3542 = vmatprep.subr.bf16.mxu1 %v3895_v63 }
 0x3b4   :  { %3544 = vmatpush3.bf16.msra.mxu1 %v3543_v54 }
 0x3b5   :  { %3545 = vmatprep.subr.bf16.mxu1 %v3895_v63 }
 0x3b8   :  { %3547 = vmatpush3.bf16.msra.mxu1 %v3546_v6 }
 0x3b9   :  { %3548 = vmatprep.subr.bf16.mxu1 %v3895_v63 }
 0x3bc   :  { %3550 = vmatpush3.bf16.msra.mxu1 %v3549_v46 }
 0x3bd   :  { %3551 = vmatprep.subr.bf16.mxu1 %v3895_v63 }
 0x3c0   :  { %3553 = vmatpush3.bf16.msra.mxu1 %v3552_v13 }
 0x3fc   :  { %v2952_v24 = vpop.f32.mrb[18].mxu0 }
 0x3fd   :  { %v2129_v4 = vpop.f32.mrb[19].mxu0 }
 0x408   :  { %v2958_v7 = vpop.f32.mrb[22].mxu0 }
 0x409   :  { %v2146_v20 = vpop.f32.mrb[23].mxu0 }
 0x418   :  { %v2996_v16 = vpop.f32.mrb[24].mxu0 }
 0x419   :  { %v2228_v17 = vpop.f32.mrb[25].mxu0 }
 0x420   :  { %v3002_v18 = vpop.f32.mrb[26].mxu0 }
 0x421   :  { %v2245_v8 = vpop.f32.mrb[27].mxu0 }
 0x438   :  { %v3040_v19 = vpop.f32.mrb[28].mxu0 }
 0x439   :  { %v2344_v22 = vpop.f32.mrb[29].mxu0 }
 0x440   :  { %v3046_v31 = vpop.f32.mrb[30].mxu0 }
 0x441   :  { %v2361_v33 = vpop.f32.mrb[31].mxu0 }
 0x458   :  { %v3084_v10 = vpop.f32.mrb[32].mxu0 }
 0x459   :  { %v2462_v37 = vpop.f32.mrb[33].mxu0 }
 0x460   :  { %v3090_v38 = vpop.f32.mrb[34].mxu0 }
 0x461   :  { %v2479_v39 = vpop.f32.mrb[35].mxu0 }
 0x474   :  { %v3125_v43 = vpop.f32.mrb[16].mxu0 }
 0x475   :  { %v2571_v47 = vpop.f32.mrb[17].mxu0 }
 0x478   :  { %v3128_v44 = vpop.f32.mrb[36].mxu0 }
 0x479   :  { %v2580_v49 = vpop.f32.mrb[37].mxu0 }
 0x47c   :  { %v3131_v48 = vpop.f32.mrb[20].mxu0 }
 0x47d   :  { %v2588_v50 = vpop.f32.mrb[21].mxu0 }
 0x47e   :  { %v2607_v0 = vrot.slane %v2588_v50, 7 }
 0x480   :  { %v2610_v26 = vsel %vm2609_vm7, %v2571_v47, %v2607_v0  ;;  %v3134_v53 = vpop.f32.mrb[38].mxu0 }
 0x481   :  { %v2618_v56 = vadd.f32 %v2776_v51, %v2610_v26  ;;  %v2597_v57 = vpop.f32.mrb[39].mxu0 }
 0x483   :  { %v2619_v58 = vmul.f32 0.5, %v2618_v56 }
 0x485   :  { %3743 = vtanh.f32 %v2619_v58 }
 0x48f   :  { %v3744_v3 = vpop.eup %3743 }
 0x490   :  { %v2621_v35 = vmul.f32 0.5, %v3744_v3 }
 0x492   :  { %v2622_v27 = vadd.f32 0.5, %v2621_v35 }
 0x494   :  { %3168 = vmatmul.mubr.f32.vlgmr.msra.gmra.mrb[32].mxu1 %v2622_v27 }
 0x567   :  { %v2712_v55 = vpop.f32.mrb[32].mxu1 }
 0x568   :  { %v2713_v29 = vadd.f32 %v2777_v12, %v2712_v55  ;;  %v3169_v32 = vpop.f32.mrb[33].mxu1 }
 0x56a   :  { %2716 = vst [vmem:[#allocation11] sm:$0x3] %v2713_v29 }
 0x56b   :  { %3866 = shalt.err (!%p3863_p2)
}
 0x56c   :  { %s3867_s17 = scalar_lea.hbm %s4539_s9, 32 }
 0x56d   :  { %p3868_p3 = scmp.ne.s32.totalorder %s4539_s9, %s3867_s17  ;;  %p3871_p4 = scmp.lt.u32.totalorder %s3867_s17, %s4539_s9 }
 0x56f   :  { %p3873_p5 = pnand %p3871_p4, %p3868_p3 }
 0x571   :  { %3876 = shalt.err (!%p3873_p5)
}
 0x572   :  { %2726 = dma.vmem_to_hbm [thread:$0]  %s2724_s1, 32, %s4539_s9, [#allocation4]  }
 0x573   :  { %3883 = dma.done.wait [#allocation4], 32  }
 0x574   :  { %3884 = vsyncadd [#allocation4], 4294967264 }
 0x575   :  { %2730 = vsyncpa [#allocation3], 1 }
 0x576   :  { %2731 = vsyncpa [#allocation6], 1 }
 0x577   :  { %2732 = vsyncpa [#allocation9], 1 }
 0x578   :  { %2733 = vsyncpa [#allocation4], 1 }

</bundles_post_ra>
